<compile_context>
chip_gen: v6e
topology: v6e:2x2x1
jax: 0.10.0
libtpu: 0.0.40
codegen_flags: <defaults>
</compile_context>

<pallas_src>
import functools
import math

import jax
import jax.numpy as jnp
from jax.experimental import pallas as pl
from jax.experimental.pallas import tpu as pltpu


def _fast_recip(x):
    # EUP reciprocal estimate + one Newton-Raphson step: the divide leaves the
    # VALU (free EUP slot) while the result stays within ~1e-6 of exact f32.
    r = pl.reciprocal(x, approx=True)
    return r * (2.0 - x * r)


# ----------------------------- Pallas kernel --------------------------------
def _user_encoder_kernel(news_ref, mask_rows_ref, mask_keys_ref, pad_ref,
                         wqkv_ref, bqkv_ref, w1_ref, b1_ref, w2t_ref, b2_ref,
                         out_ref, ctx_scr, *, num_heads, use_log_mask):
    tb, hist, dim = news_ref.shape           # (TB, H, D) block of users
    dh = dim // num_heads

    x3 = news_ref[...]                       # (TB, H, D)
    m_rows = mask_rows_ref[...]              # (TB, H, 1) float {0,1}

    if not use_log_mask:
        # news_vecs = news_vecs * mask + pad_doc * (1 - mask)
        pad = pad_ref[...]                   # (1, D), broadcasts over (TB, H, D)
        x3 = x3 * m_rows + pad * (1.0 - m_rows)

    # --- fused Q/K/V projection over all TB users at once (one MXU pass) ---
    x2 = x3.reshape(tb * hist, dim)          # row-merge only (H == 8 sublanes)
    qkv = jnp.dot(x2, wqkv_ref[...],
                  preferred_element_type=jnp.float32) + bqkv_ref[...]   # (TB*H, 3D)
    qkv3 = qkv.reshape(tb, hist, 3 * dim)

    # --- multi-head self attention (NRMS style: no out-proj) ---------------
    scale = 1.0 / math.sqrt(dh)
    if use_log_mask:
        key_mask = mask_keys_ref[...]        # (TB, 1, H): key-axis layout

    for h in range(num_heads):               # static, unrolled head loop
        q_h = qkv3[:, :, h * dh:(h + 1) * dh]                       # (TB, H, dh)
        k_h = qkv3[:, :, dim + h * dh:dim + (h + 1) * dh]
        v_h = qkv3[:, :, 2 * dim + h * dh:2 * dim + (h + 1) * dh]
        s = jnp.einsum("bqd,bkd->bqk", q_h, k_h,
                       preferred_element_type=jnp.float32) * scale  # (TB, H, H)
        e = jnp.exp(s)                       # matches module: no max-subtraction
        if use_log_mask:
            e = e * key_mask
        attn = e * _fast_recip(jnp.sum(e, axis=-1, keepdims=True) + 1e-8)
        ctx_scr[:, :, h * dh:(h + 1) * dh] = jnp.einsum(
            "bqk,bkd->bqd", attn, v_h, preferred_element_type=jnp.float32)

    ctx3 = ctx_scr[...]                      # (TB, H, D)

    # --- AttentionPooling ---------------------------------------------------
    ctx2 = ctx3.reshape(tb * hist, dim)
    e1 = jnp.tanh(jnp.dot(ctx2, w1_ref[...],
                          preferred_element_type=jnp.float32) + b1_ref[...])  # (TB*H, Q)
    e13 = e1.reshape(tb, hist, e1.shape[-1])                        # (TB, H, Q)
    # fc2 has a single output column: do it as a lane-reduce against w2^T
    logit = jnp.sum(e13 * w2t_ref[...], axis=-1, keepdims=True) + b2_ref[...]  # (TB,H,1)
    alpha = jnp.exp(logit)
    if use_log_mask:
        alpha = alpha * m_rows
    alpha = alpha * _fast_recip(jnp.sum(alpha, axis=1, keepdims=True) + 1e-8)
    out_ref[...] = jnp.sum(ctx3 * alpha, axis=1).astype(out_ref.dtype)   # (TB, D)


# ------------------------------- wrapper -------------------------------------
def user_encoder(news_vecs, log_mask, params, *, num_heads,
                 use_log_mask=False, block_users=64):
    B, H, D = news_vecs.shape
    Qd = params["w1"].shape[1]

    tb = max(1, min(block_users, B))
    b_pad = pl.cdiv(B, tb) * tb
    if b_pad != B:                           # pad batch to a multiple of TB
        extra = b_pad - B
        news_vecs = jnp.concatenate(
            [news_vecs, jnp.zeros((extra, H, D), news_vecs.dtype)], axis=0)
        log_mask = jnp.concatenate(
            [log_mask, jnp.zeros((extra, H), log_mask.dtype)], axis=0)

    maskf = log_mask.astype(jnp.float32)
    mask_rows = maskf[:, :, None]            # (B', H, 1) query/row layout
    mask_keys = maskf[:, None, :]            # (B', 1, H) key layout

    # Fuse Q/K/V weights + biases once in the wrapper.
    wqkv = jnp.concatenate([params["wq"], params["wk"], params["wv"]], axis=1)  # (D, 3D)
    bqkv = jnp.concatenate([params["bq"], params["bk"], params["bv"]], axis=1)  # (1, 3D)
    w2t = params["w2"].T                                                        # (1, Qd)

    kernel = functools.partial(_user_encoder_kernel,
                               num_heads=num_heads,
                               use_log_mask=use_log_mask)

    def fixed(shape):
        return pl.BlockSpec(shape, lambda b, _n=len(shape): (0,) * _n)

    out = pl.pallas_call(
        kernel,
        out_shape=jax.ShapeDtypeStruct((b_pad, D), jnp.float32),
        grid=(b_pad // tb,),
        in_specs=[
            pl.BlockSpec((tb, H, D), lambda b: (b, 0, 0)),   # news_vecs block
            pl.BlockSpec((tb, H, 1), lambda b: (b, 0, 0)),   # mask (row layout)
            pl.BlockSpec((tb, 1, H), lambda b: (b, 0, 0)),   # mask (key layout)
            fixed((1, D)),                                   # pad_doc
            fixed((D, 3 * D)), fixed((1, 3 * D)),            # fused Wqkv, bqkv
            fixed((D, Qd)), fixed((1, Qd)),                  # att_fc1
            fixed((1, Qd)), fixed((1, 1)),                   # att_fc2 (w^T, b)
        ],
        out_specs=pl.BlockSpec((tb, D), lambda b: (b, 0)),   # 2-D (B, D) output
        scratch_shapes=[pltpu.VMEM((tb, H, D), jnp.float32)],  # per-head ctx slab
        compiler_params=pltpu.CompilerParams(
            dimension_semantics=("parallel",)),
    )(news_vecs, mask_rows, mask_keys, params["pad_doc"], wqkv, bqkv,
      params["w1"], params["b1"], w2t, params["b2"])
    return out[:B]                                           # (B, D)


# ------------------------ deterministic parameter init -----------------------
def init_params(key, news_dim, query_dim):
    keys = jax.random.split(key, 11)

    def lin(kw, kb, fan_in, fan_out):
        bound = 1.0 / math.sqrt(fan_in)
        w = jax.random.uniform(kw, (fan_in, fan_out), jnp.float32, -bound, bound)
        b = jax.random.uniform(kb, (1, fan_out), jnp.float32, -bound, bound)
        return w, b

    wq, bq = lin(keys[0], keys[1], news_dim, news_dim)
    wk, bk = lin(keys[2], keys[3], news_dim, news_dim)
    wv, bv = lin(keys[4], keys[5], news_dim, news_dim)
    w1, b1 = lin(keys[6], keys[7], news_dim, query_dim)
    w2, b2 = lin(keys[8], keys[9], query_dim, 1)
    pad_doc = jax.random.uniform(keys[10], (1, news_dim), jnp.float32, -1.0, 1.0)
    return dict(wq=wq, bq=bq, wk=wk, bk=bk, wv=wv, bv=bv,
                w1=w1, b1=b1, w2=w2, b2=b2, pad_doc=pad_doc)


# --------------------------- pure-JAX reference ------------------------------
def user_encoder_ref(news, mask, params, *, num_heads, use_log_mask):
    B, H, D = news.shape
    dh = D // num_heads
    m = mask.astype(jnp.float32)[..., None]                       # (B, H, 1)
    x = news
    if not use_log_mask:
        x = x * m + params["pad_doc"] * (1.0 - m)
    q = x @ params["wq"] + params["bq"]
    k = x @ params["wk"] + params["bk"]
    v = x @ params["wv"] + params["bv"]
    qh = q.reshape(B, H, num_heads, dh).transpose(0, 2, 1, 3)
    kh = k.reshape(B, H, num_heads, dh).transpose(0, 2, 1, 3)
    vh = v.reshape(B, H, num_heads, dh).transpose(0, 2, 1, 3)
    s = jnp.einsum("bnqd,bnkd->bnqk", qh, kh) / math.sqrt(dh)
    e = jnp.exp(s)
    if use_log_mask:
        e = e * mask.astype(jnp.float32)[:, None, None, :]
    attn = e / (e.sum(-1, keepdims=True) + 1e-8)
    ctx = jnp.einsum("bnqk,bnkd->bnqd", attn, vh).transpose(0, 2, 1, 3).reshape(B, H, D)
    e1 = jnp.tanh(ctx @ params["w1"] + params["b1"])
    alpha = jnp.exp(e1 @ params["w2"] + params["b2"])
    if use_log_mask:
        alpha = alpha * m
    alpha = alpha / (alpha.sum(1, keepdims=True) + 1e-8)
    return jnp.einsum("bhd,bho->bd", ctx, alpha)


# --------------------------------- main ---------------------------------------
if __name__ == "__main__":
    # args: news_dim=32, num_attention_heads=4, user_query_vector_dim=32,
    #       user_log_length=8
    B, H, D, NH, QD = 16, 8, 32, 4, 32
    TB = 8   # 2 user-blocks per call -> >= 2 parallel grid steps (v7x 2 TCs)

    key = jax.random.PRNGKey(0)
    k_news, k_mask, k_par = jax.random.split(key, 3)
    news_vecs = jax.random.normal(k_news, (B, H, D), jnp.float32)
    log_mask = (jax.random.uniform(k_mask, (B, H)) > 0.3).astype(jnp.float32)
    params = init_params(k_par, D, QD)

    ok = True
    for use_log_mask in (False, True):   # both branches of UserEncoder.forward
        out = user_encoder(news_vecs, log_mask, params,
                           num_heads=NH, use_log_mask=use_log_mask,
                           block_users=TB)
        out = jax.block_until_ready(out)
        ref = user_encoder_ref(news_vecs, log_mask, params,
                               num_heads=NH, use_log_mask=use_log_mask)
        # 1e-3 tolerance: accounts for the approx-reciprocal seed (+Newton) and
        # the reordered (fused/batched) accumulations vs. the XLA reference.
        ok &= bool(jnp.allclose(out, ref, atol=1e-3, rtol=1e-3))

    if ok:
        print("KERNEL_OK")
    else:
        print("MISMATCH")
</pallas_src>

<mosaic_0001>
module attributes {stable_mosaic.version = 11 : i64} {
  func.func @_user_encoder_kernel(%arg0: i32, %arg1: memref<8x8x32xf32, #tpu.memory_space<vmem>>, %arg2: memref<8x8x1xf32, #tpu.memory_space<vmem>>, %arg3: memref<8x1x8xf32, #tpu.memory_space<vmem>>, %arg4: memref<1x32xf32, #tpu.memory_space<vmem>>, %arg5: memref<32x96xf32, #tpu.memory_space<vmem>>, %arg6: memref<1x96xf32, #tpu.memory_space<vmem>>, %arg7: memref<32x32xf32, #tpu.memory_space<vmem>>, %arg8: memref<1x32xf32, #tpu.memory_space<vmem>>, %arg9: memref<1x32xf32, #tpu.memory_space<vmem>>, %arg10: memref<1x1xf32, #tpu.memory_space<vmem>>, %arg11: memref<8x32xf32, #tpu.memory_space<vmem>>, %arg12: memref<8x8x32xf32, #tpu.memory_space<vmem>>) attributes {dimension_semantics = [#tpu.dimension_semantics<parallel>], iteration_bounds = array<i64: 2>, scalar_prefetch = 0 : i64, scratch_operands = 1 : i64, tpu.core_type = #tpu.core_type<tc>, window_params = [{transform_indices = @transform_0, window_bounds = array<i64: 8, 8, 32>}, {transform_indices = @transform_1, window_bounds = array<i64: 8, 8, 1>}, {transform_indices = @transform_2, window_bounds = array<i64: 8, 1, 8>}, {pipeline_mode = #tpu.pipeline_mode<synchronous>, transform_indices = @transform_3, window_bounds = array<i64: 1, 32>}, {pipeline_mode = #tpu.pipeline_mode<synchronous>, transform_indices = @transform_4, window_bounds = array<i64: 32, 96>}, {pipeline_mode = #tpu.pipeline_mode<synchronous>, transform_indices = @transform_5, window_bounds = array<i64: 1, 96>}, {pipeline_mode = #tpu.pipeline_mode<synchronous>, transform_indices = @transform_6, window_bounds = array<i64: 32, 32>}, {pipeline_mode = #tpu.pipeline_mode<synchronous>, transform_indices = @transform_7, window_bounds = array<i64: 1, 32>}, {pipeline_mode = #tpu.pipeline_mode<synchronous>, transform_indices = @transform_8, window_bounds = array<i64: 1, 32>}, {pipeline_mode = #tpu.pipeline_mode<synchronous>, transform_indices = @transform_9, window_bounds = array<i64: 1, 1>}, {transform_indices = @transform_10, window_bounds = array<i64: 8, 32>}]} {
    %c0 = arith.constant 0 : index
    %c0_0 = arith.constant 0 : index
    %c0_1 = arith.constant 0 : index
    %0 = vector.load %arg1[%c0, %c0_0, %c0_1] : memref<8x8x32xf32, #tpu.memory_space<vmem>>, vector<8x8x32xf32>
    %c0_2 = arith.constant 0 : index
    %c0_3 = arith.constant 0 : index
    %c0_4 = arith.constant 0 : index
    %1 = vector.load %arg2[%c0_2, %c0_3, %c0_4] : memref<8x8x1xf32, #tpu.memory_space<vmem>>, vector<8x8x1xf32>
    %c0_5 = arith.constant 0 : index
    %c0_6 = arith.constant 0 : index
    %2 = vector.load %arg4[%c0_5, %c0_6] : memref<1x32xf32, #tpu.memory_space<vmem>>, vector<1x32xf32>
    %3 = vector.broadcast %1 : vector<8x8x1xf32> to vector<8x8x32xf32>
    %4 = arith.mulf %0, %3 : vector<8x8x32xf32>
    %cst = arith.constant 1.000000e+00 : f32
    %5 = vector.broadcast %cst : f32 to vector<8x8x1xf32>
    %6 = arith.subf %5, %1 : vector<8x8x1xf32>
    %7 = vector.shape_cast %2 : vector<1x32xf32> to vector<1x1x32xf32>
    %8 = vector.broadcast %7 : vector<1x1x32xf32> to vector<8x8x32xf32>
    %9 = vector.broadcast %6 : vector<8x8x1xf32> to vector<8x8x32xf32>
    %10 = arith.mulf %8, %9 : vector<8x8x32xf32>
    %11 = arith.addf %4, %10 : vector<8x8x32xf32>
    %12 = vector.shape_cast %11 : vector<8x8x32xf32> to vector<64x32xf32>
    %c0_7 = arith.constant 0 : index
    %c0_8 = arith.constant 0 : index
    %13 = vector.load %arg5[%c0_7, %c0_8] : memref<32x96xf32, #tpu.memory_space<vmem>>, vector<32x96xf32>
    %cst_9 = arith.constant dense<0.000000e+00> : vector<64x96xf32>
    %14 = tpu.matmul %12, %13, %cst_9 {dimension_numbers = #tpu.dot_dimension_numbers<[1], [0], [0], [1], [0, 0, 1, 1], [], []>} : vector<64x32xf32>, vector<32x96xf32>, vector<64x96xf32> -> vector<64x96xf32>
    %c0_10 = arith.constant 0 : index
    %c0_11 = arith.constant 0 : index
    %15 = vector.load %arg6[%c0_10, %c0_11] : memref<1x96xf32, #tpu.memory_space<vmem>>, vector<1x96xf32>
    %16 = vector.broadcast %15 : vector<1x96xf32> to vector<64x96xf32>
    %17 = arith.addf %14, %16 : vector<64x96xf32>
    %18 = vector.shape_cast %17 : vector<64x96xf32> to vector<8x8x96xf32>
    %19 = vector.extract_strided_slice %18 {offsets = [0, 0, 0], sizes = [8, 8, 8], strides = [1, 1, 1]} : vector<8x8x96xf32> to vector<8x8x8xf32>
    %20 = vector.extract_strided_slice %18 {offsets = [0, 0, 32], sizes = [8, 8, 8], strides = [1, 1, 1]} : vector<8x8x96xf32> to vector<8x8x8xf32>
    %21 = vector.extract_strided_slice %18 {offsets = [0, 0, 64], sizes = [8, 8, 8], strides = [1, 1, 1]} : vector<8x8x96xf32> to vector<8x8x8xf32>
    "tpu.trace_start"() <{level = 10 : i32, message = "bqd,bkd->bqk"}> : () -> ()
    %cst_12 = arith.constant dense<0.000000e+00> : vector<8x8x8xf32>
    %22 = tpu.matmul %19, %20, %cst_12 {dimension_numbers = #tpu.dot_dimension_numbers<[2], [2], [1], [1], [0, 0, 0, 1, 1, 1], [0], [0]>} : vector<8x8x8xf32>, vector<8x8x8xf32>, vector<8x8x8xf32> -> vector<8x8x8xf32>
    "tpu.trace_stop"() : () -> ()
    %cst_13 = arith.constant 0.353553385 : f32
    %23 = vector.broadcast %cst_13 : f32 to vector<8x8x8xf32>
    %24 = arith.mulf %22, %23 : vector<8x8x8xf32>
    %25 = math.exp %24 : vector<8x8x8xf32>
    %cst_14 = arith.constant dense<0.000000e+00> : vector<8x8xf32>
    %26 = vector.multi_reduction <add>, %25, %cst_14 [2] : vector<8x8x8xf32> to vector<8x8xf32>
    %27 = vector.shape_cast %26 : vector<8x8xf32> to vector<8x8x1xf32>
    %cst_15 = arith.constant 9.99999993E-9 : f32
    %28 = vector.broadcast %cst_15 : f32 to vector<8x8x1xf32>
    %29 = arith.addf %27, %28 : vector<8x8x1xf32>
    %30 = tpu.reciprocal %29 {approx = true} : vector<8x8x1xf32> -> vector<8x8x1xf32>
    %31 = arith.mulf %29, %30 : vector<8x8x1xf32>
    %cst_16 = arith.constant 2.000000e+00 : f32
    %32 = vector.broadcast %cst_16 : f32 to vector<8x8x1xf32>
    %33 = arith.subf %32, %31 : vector<8x8x1xf32>
    %34 = arith.mulf %30, %33 : vector<8x8x1xf32>
    %35 = vector.broadcast %34 : vector<8x8x1xf32> to vector<8x8x8xf32>
    %36 = arith.mulf %25, %35 : vector<8x8x8xf32>
    "tpu.trace_start"() <{level = 10 : i32, message = "bqk,bkd->bqd"}> : () -> ()
    %cst_17 = arith.constant dense<0.000000e+00> : vector<8x8x8xf32>
    %37 = tpu.matmul %36, %21, %cst_17 {dimension_numbers = #tpu.dot_dimension_numbers<[2], [1], [1], [2], [0, 0, 0, 1, 1, 2], [0], [0]>} : vector<8x8x8xf32>, vector<8x8x8xf32>, vector<8x8x8xf32> -> vector<8x8x8xf32>
    "tpu.trace_stop"() : () -> ()
    %c0_18 = arith.constant 0 : index
    %c0_19 = arith.constant 0 : index
    %c0_20 = arith.constant 0 : index
    %38 = vector.load %arg12[%c0_18, %c0_19, %c0_20] : memref<8x8x32xf32, #tpu.memory_space<vmem>>, vector<8x8x8xf32>
    tpu.vector_store %arg12[%c0_18, %c0_19, %c0_20], %37 {strides = array<i32>} : memref<8x8x32xf32, #tpu.memory_space<vmem>>, vector<8x8x8xf32>,
    %39 = vector.extract_strided_slice %18 {offsets = [0, 0, 8], sizes = [8, 8, 8], strides = [1, 1, 1]} : vector<8x8x96xf32> to vector<8x8x8xf32>
    %40 = vector.extract_strided_slice %18 {offsets = [0, 0, 40], sizes = [8, 8, 8], strides = [1, 1, 1]} : vector<8x8x96xf32> to vector<8x8x8xf32>
    %41 = vector.extract_strided_slice %18 {offsets = [0, 0, 72], sizes = [8, 8, 8], strides = [1, 1, 1]} : vector<8x8x96xf32> to vector<8x8x8xf32>
    "tpu.trace_start"() <{level = 10 : i32, message = "bqd,bkd->bqk"}> : () -> ()
    %cst_21 = arith.constant dense<0.000000e+00> : vector<8x8x8xf32>
    %42 = tpu.matmul %39, %40, %cst_21 {dimension_numbers = #tpu.dot_dimension_numbers<[2], [2], [1], [1], [0, 0, 0, 1, 1, 1], [0], [0]>} : vector<8x8x8xf32>, vector<8x8x8xf32>, vector<8x8x8xf32> -> vector<8x8x8xf32>
    "tpu.trace_stop"() : () -> ()
    %cst_22 = arith.constant 0.353553385 : f32
    %43 = vector.broadcast %cst_22 : f32 to vector<8x8x8xf32>
    %44 = arith.mulf %42, %43 : vector<8x8x8xf32>
    %45 = math.exp %44 : vector<8x8x8xf32>
    %cst_23 = arith.constant dense<0.000000e+00> : vector<8x8xf32>
    %46 = vector.multi_reduction <add>, %45, %cst_23 [2] : vector<8x8x8xf32> to vector<8x8xf32>
    %47 = vector.shape_cast %46 : vector<8x8xf32> to vector<8x8x1xf32>
    %cst_24 = arith.constant 9.99999993E-9 : f32
    %48 = vector.broadcast %cst_24 : f32 to vector<8x8x1xf32>
    %49 = arith.addf %47, %48 : vector<8x8x1xf32>
    %50 = tpu.reciprocal %49 {approx = true} : vector<8x8x1xf32> -> vector<8x8x1xf32>
    %51 = arith.mulf %49, %50 : vector<8x8x1xf32>
    %cst_25 = arith.constant 2.000000e+00 : f32
    %52 = vector.broadcast %cst_25 : f32 to vector<8x8x1xf32>
    %53 = arith.subf %52, %51 : vector<8x8x1xf32>
    %54 = arith.mulf %50, %53 : vector<8x8x1xf32>
    %55 = vector.broadcast %54 : vector<8x8x1xf32> to vector<8x8x8xf32>
    %56 = arith.mulf %45, %55 : vector<8x8x8xf32>
    "tpu.trace_start"() <{level = 10 : i32, message = "bqk,bkd->bqd"}> : () -> ()
    %cst_26 = arith.constant dense<0.000000e+00> : vector<8x8x8xf32>
    %57 = tpu.matmul %56, %41, %cst_26 {dimension_numbers = #tpu.dot_dimension_numbers<[2], [1], [1], [2], [0, 0, 0, 1, 1, 2], [0], [0]>} : vector<8x8x8xf32>, vector<8x8x8xf32>, vector<8x8x8xf32> -> vector<8x8x8xf32>
    "tpu.trace_stop"() : () -> ()
    %c0_27 = arith.constant 0 : index
    %c0_28 = arith.constant 0 : index
    %c8 = arith.constant 8 : index
    %58 = vector.load %arg12[%c0_27, %c0_28, %c8] : memref<8x8x32xf32, #tpu.memory_space<vmem>>, vector<8x8x8xf32>
    tpu.vector_store %arg12[%c0_27, %c0_28, %c8], %57 {strides = array<i32>} : memref<8x8x32xf32, #tpu.memory_space<vmem>>, vector<8x8x8xf32>,
    %59 = vector.extract_strided_slice %18 {offsets = [0, 0, 16], sizes = [8, 8, 8], strides = [1, 1, 1]} : vector<8x8x96xf32> to vector<8x8x8xf32>
    %60 = vector.extract_strided_slice %18 {offsets = [0, 0, 48], sizes = [8, 8, 8], strides = [1, 1, 1]} : vector<8x8x96xf32> to vector<8x8x8xf32>
    %61 = vector.extract_strided_slice %18 {offsets = [0, 0, 80], sizes = [8, 8, 8], strides = [1, 1, 1]} : vector<8x8x96xf32> to vector<8x8x8xf32>
    "tpu.trace_start"() <{level = 10 : i32, message = "bqd,bkd->bqk"}> : () -> ()
    %cst_29 = arith.constant dense<0.000000e+00> : vector<8x8x8xf32>
    %62 = tpu.matmul %59, %60, %cst_29 {dimension_numbers = #tpu.dot_dimension_numbers<[2], [2], [1], [1], [0, 0, 0, 1, 1, 1], [0], [0]>} : vector<8x8x8xf32>, vector<8x8x8xf32>, vector<8x8x8xf32> -> vector<8x8x8xf32>
    "tpu.trace_stop"() : () -> ()
    %cst_30 = arith.constant 0.353553385 : f32
    %63 = vector.broadcast %cst_30 : f32 to vector<8x8x8xf32>
    %64 = arith.mulf %62, %63 : vector<8x8x8xf32>
    %65 = math.exp %64 : vector<8x8x8xf32>
    %cst_31 = arith.constant dense<0.000000e+00> : vector<8x8xf32>
    %66 = vector.multi_reduction <add>, %65, %cst_31 [2] : vector<8x8x8xf32> to vector<8x8xf32>
    %67 = vector.shape_cast %66 : vector<8x8xf32> to vector<8x8x1xf32>
    %cst_32 = arith.constant 9.99999993E-9 : f32
    %68 = vector.broadcast %cst_32 : f32 to vector<8x8x1xf32>
    %69 = arith.addf %67, %68 : vector<8x8x1xf32>
    %70 = tpu.reciprocal %69 {approx = true} : vector<8x8x1xf32> -> vector<8x8x1xf32>
    %71 = arith.mulf %69, %70 : vector<8x8x1xf32>
    %cst_33 = arith.constant 2.000000e+00 : f32
    %72 = vector.broadcast %cst_33 : f32 to vector<8x8x1xf32>
    %73 = arith.subf %72, %71 : vector<8x8x1xf32>
    %74 = arith.mulf %70, %73 : vector<8x8x1xf32>
    %75 = vector.broadcast %74 : vector<8x8x1xf32> to vector<8x8x8xf32>
    %76 = arith.mulf %65, %75 : vector<8x8x8xf32>
    "tpu.trace_start"() <{level = 10 : i32, message = "bqk,bkd->bqd"}> : () -> ()
    %cst_34 = arith.constant dense<0.000000e+00> : vector<8x8x8xf32>
    %77 = tpu.matmul %76, %61, %cst_34 {dimension_numbers = #tpu.dot_dimension_numbers<[2], [1], [1], [2], [0, 0, 0, 1, 1, 2], [0], [0]>} : vector<8x8x8xf32>, vector<8x8x8xf32>, vector<8x8x8xf32> -> vector<8x8x8xf32>
    "tpu.trace_stop"() : () -> ()
    %c0_35 = arith.constant 0 : index
    %c0_36 = arith.constant 0 : index
    %c16 = arith.constant 16 : index
    %78 = vector.load %arg12[%c0_35, %c0_36, %c16] : memref<8x8x32xf32, #tpu.memory_space<vmem>>, vector<8x8x8xf32>
    tpu.vector_store %arg12[%c0_35, %c0_36, %c16], %77 {strides = array<i32>} : memref<8x8x32xf32, #tpu.memory_space<vmem>>, vector<8x8x8xf32>,
    %79 = vector.extract_strided_slice %18 {offsets = [0, 0, 24], sizes = [8, 8, 8], strides = [1, 1, 1]} : vector<8x8x96xf32> to vector<8x8x8xf32>
    %80 = vector.extract_strided_slice %18 {offsets = [0, 0, 56], sizes = [8, 8, 8], strides = [1, 1, 1]} : vector<8x8x96xf32> to vector<8x8x8xf32>
    %81 = vector.extract_strided_slice %18 {offsets = [0, 0, 88], sizes = [8, 8, 8], strides = [1, 1, 1]} : vector<8x8x96xf32> to vector<8x8x8xf32>
    "tpu.trace_start"() <{level = 10 : i32, message = "bqd,bkd->bqk"}> : () -> ()
    %cst_37 = arith.constant dense<0.000000e+00> : vector<8x8x8xf32>
    %82 = tpu.matmul %79, %80, %cst_37 {dimension_numbers = #tpu.dot_dimension_numbers<[2], [2], [1], [1], [0, 0, 0, 1, 1, 1], [0], [0]>} : vector<8x8x8xf32>, vector<8x8x8xf32>, vector<8x8x8xf32> -> vector<8x8x8xf32>
    "tpu.trace_stop"() : () -> ()
    %cst_38 = arith.constant 0.353553385 : f32
    %83 = vector.broadcast %cst_38 : f32 to vector<8x8x8xf32>
    %84 = arith.mulf %82, %83 : vector<8x8x8xf32>
    %85 = math.exp %84 : vector<8x8x8xf32>
    %cst_39 = arith.constant dense<0.000000e+00> : vector<8x8xf32>
    %86 = vector.multi_reduction <add>, %85, %cst_39 [2] : vector<8x8x8xf32> to vector<8x8xf32>
    %87 = vector.shape_cast %86 : vector<8x8xf32> to vector<8x8x1xf32>
    %cst_40 = arith.constant 9.99999993E-9 : f32
    %88 = vector.broadcast %cst_40 : f32 to vector<8x8x1xf32>
    %89 = arith.addf %87, %88 : vector<8x8x1xf32>
    %90 = tpu.reciprocal %89 {approx = true} : vector<8x8x1xf32> -> vector<8x8x1xf32>
    %91 = arith.mulf %89, %90 : vector<8x8x1xf32>
    %cst_41 = arith.constant 2.000000e+00 : f32
    %92 = vector.broadcast %cst_41 : f32 to vector<8x8x1xf32>
    %93 = arith.subf %92, %91 : vector<8x8x1xf32>
    %94 = arith.mulf %90, %93 : vector<8x8x1xf32>
    %95 = vector.broadcast %94 : vector<8x8x1xf32> to vector<8x8x8xf32>
    %96 = arith.mulf %85, %95 : vector<8x8x8xf32>
    "tpu.trace_start"() <{level = 10 : i32, message = "bqk,bkd->bqd"}> : () -> ()
    %cst_42 = arith.constant dense<0.000000e+00> : vector<8x8x8xf32>
    %97 = tpu.matmul %96, %81, %cst_42 {dimension_numbers = #tpu.dot_dimension_numbers<[2], [1], [1], [2], [0, 0, 0, 1, 1, 2], [0], [0]>} : vector<8x8x8xf32>, vector<8x8x8xf32>, vector<8x8x8xf32> -> vector<8x8x8xf32>
    "tpu.trace_stop"() : () -> ()
    %c0_43 = arith.constant 0 : index
    %c0_44 = arith.constant 0 : index
    %c24 = arith.constant 24 : index
    %98 = vector.load %arg12[%c0_43, %c0_44, %c24] : memref<8x8x32xf32, #tpu.memory_space<vmem>>, vector<8x8x8xf32>
    tpu.vector_store %arg12[%c0_43, %c0_44, %c24], %97 {strides = array<i32>} : memref<8x8x32xf32, #tpu.memory_space<vmem>>, vector<8x8x8xf32>,
    %c0_45 = arith.constant 0 : index
    %c0_46 = arith.constant 0 : index
    %c0_47 = arith.constant 0 : index
    %99 = vector.load %arg12[%c0_45, %c0_46, %c0_47] : memref<8x8x32xf32, #tpu.memory_space<vmem>>, vector<8x8x32xf32>
    %100 = vector.shape_cast %99 : vector<8x8x32xf32> to vector<64x32xf32>
    %c0_48 = arith.constant 0 : index
    %c0_49 = arith.constant 0 : index
    %101 = vector.load %arg7[%c0_48, %c0_49] : memref<32x32xf32, #tpu.memory_space<vmem>>, vector<32x32xf32>
    %cst_50 = arith.constant dense<0.000000e+00> : vector<64x32xf32>
    %102 = tpu.matmul %100, %101, %cst_50 {dimension_numbers = #tpu.dot_dimension_numbers<[1], [0], [0], [1], [0, 0, 1, 1], [], []>} : vector<64x32xf32>, vector<32x32xf32>, vector<64x32xf32> -> vector<64x32xf32>
    %c0_51 = arith.constant 0 : index
    %c0_52 = arith.constant 0 : index
    %103 = vector.load %arg8[%c0_51, %c0_52] : memref<1x32xf32, #tpu.memory_space<vmem>>, vector<1x32xf32>
    %104 = vector.broadcast %103 : vector<1x32xf32> to vector<64x32xf32>
    %105 = arith.addf %102, %104 : vector<64x32xf32>
    %106 = math.tanh %105 : vector<64x32xf32>
    %107 = vector.shape_cast %106 : vector<64x32xf32> to vector<8x8x32xf32>
    %c0_53 = arith.constant 0 : index
    %c0_54 = arith.constant 0 : index
    %108 = vector.load %arg9[%c0_53, %c0_54] : memref<1x32xf32, #tpu.memory_space<vmem>>, vector<1x32xf32>
    %109 = vector.shape_cast %108 : vector<1x32xf32> to vector<1x1x32xf32>
    %110 = vector.broadcast %109 : vector<1x1x32xf32> to vector<8x8x32xf32>
    %111 = arith.mulf %107, %110 : vector<8x8x32xf32>
    %cst_55 = arith.constant dense<0.000000e+00> : vector<8x8xf32>
    %112 = vector.multi_reduction <add>, %111, %cst_55 [2] : vector<8x8x32xf32> to vector<8x8xf32>
    %113 = vector.shape_cast %112 : vector<8x8xf32> to vector<8x8x1xf32>
    %c0_56 = arith.constant 0 : index
    %c0_57 = arith.constant 0 : index
    %114 = vector.load %arg10[%c0_56, %c0_57] : memref<1x1xf32, #tpu.memory_space<vmem>>, vector<1x1xf32>
    %115 = vector.shape_cast %114 : vector<1x1xf32> to vector<1x1x1xf32>
    %116 = vector.broadcast %115 : vector<1x1x1xf32> to vector<8x8x1xf32>
    %117 = arith.addf %113, %116 : vector<8x8x1xf32>
    %118 = math.exp %117 : vector<8x8x1xf32>
    %cst_58 = arith.constant dense<0.000000e+00> : vector<8x1xf32>
    %119 = vector.multi_reduction <add>, %118, %cst_58 [1] : vector<8x8x1xf32> to vector<8x1xf32>
    %120 = vector.shape_cast %119 : vector<8x1xf32> to vector<8x1x1xf32>
    %cst_59 = arith.constant 9.99999993E-9 : f32
    %121 = vector.broadcast %cst_59 : f32 to vector<8x1x1xf32>
    %122 = arith.addf %120, %121 : vector<8x1x1xf32>
    %123 = tpu.reciprocal %122 {approx = true} : vector<8x1x1xf32> -> vector<8x1x1xf32>
    %124 = arith.mulf %122, %123 : vector<8x1x1xf32>
    %cst_60 = arith.constant 2.000000e+00 : f32
    %125 = vector.broadcast %cst_60 : f32 to vector<8x1x1xf32>
    %126 = arith.subf %125, %124 : vector<8x1x1xf32>
    %127 = arith.mulf %123, %126 : vector<8x1x1xf32>
    %128 = vector.broadcast %127 : vector<8x1x1xf32> to vector<8x8x1xf32>
    %129 = arith.mulf %118, %128 : vector<8x8x1xf32>
    %130 = vector.broadcast %129 : vector<8x8x1xf32> to vector<8x8x32xf32>
    %131 = arith.mulf %99, %130 : vector<8x8x32xf32>
    %cst_61 = arith.constant dense<0.000000e+00> : vector<8x32xf32>
    %132 = vector.multi_reduction <add>, %131, %cst_61 [1] : vector<8x8x32xf32> to vector<8x32xf32>
    %c0_62 = arith.constant 0 : index
    %c0_63 = arith.constant 0 : index
    %133 = vector.load %arg11[%c0_62, %c0_63] : memref<8x32xf32, #tpu.memory_space<vmem>>, vector<8x32xf32>
    tpu.vector_store %arg11[%c0_62, %c0_63], %132 {strides = array<i32>} : memref<8x32xf32, #tpu.memory_space<vmem>>, vector<8x32xf32>,
    return
  }
  func.func @transform_0(%arg0: i32) -> (i32, i32, i32) {
    %c0_i32 = arith.constant 0 : i32
    %c0_i32_0 = arith.constant 0 : i32
    %c0_i32_1 = arith.constant 0 : i32
    return %arg0, %c0_i32, %c0_i32_0 : i32, i32, i32
  }
  func.func @transform_1(%arg0: i32) -> (i32, i32, i32) {
    %c0_i32 = arith.constant 0 : i32
    %c0_i32_0 = arith.constant 0 : i32
    %c0_i32_1 = arith.constant 0 : i32
    return %arg0, %c0_i32, %c0_i32_0 : i32, i32, i32
  }
  func.func @transform_2(%arg0: i32) -> (i32, i32, i32) {
    %c0_i32 = arith.constant 0 : i32
    %c0_i32_0 = arith.constant 0 : i32
    %c0_i32_1 = arith.constant 0 : i32
    return %arg0, %c0_i32, %c0_i32_0 : i32, i32, i32
  }
  func.func @transform_3(%arg0: i32) -> (i32, i32) {
    %c0_i32 = arith.constant 0 : i32
    %c0_i32_0 = arith.constant 0 : i32
    %c0_i32_1 = arith.constant 0 : i32
    return %c0_i32, %c0_i32_0 : i32, i32
  }
  func.func @transform_4(%arg0: i32) -> (i32, i32) {
    %c0_i32 = arith.constant 0 : i32
    %c0_i32_0 = arith.constant 0 : i32
    %c0_i32_1 = arith.constant 0 : i32
    return %c0_i32, %c0_i32_0 : i32, i32
  }
  func.func @transform_5(%arg0: i32) -> (i32, i32) {
    %c0_i32 = arith.constant 0 : i32
    %c0_i32_0 = arith.constant 0 : i32
    %c0_i32_1 = arith.constant 0 : i32
    return %c0_i32, %c0_i32_0 : i32, i32
  }
  func.func @transform_6(%arg0: i32) -> (i32, i32) {
    %c0_i32 = arith.constant 0 : i32
    %c0_i32_0 = arith.constant 0 : i32
    %c0_i32_1 = arith.constant 0 : i32
    return %c0_i32, %c0_i32_0 : i32, i32
  }
  func.func @transform_7(%arg0: i32) -> (i32, i32) {
    %c0_i32 = arith.constant 0 : i32
    %c0_i32_0 = arith.constant 0 : i32
    %c0_i32_1 = arith.constant 0 : i32
    return %c0_i32, %c0_i32_0 : i32, i32
  }
  func.func @transform_8(%arg0: i32) -> (i32, i32) {
    %c0_i32 = arith.constant 0 : i32
    %c0_i32_0 = arith.constant 0 : i32
    %c0_i32_1 = arith.constant 0 : i32
    return %c0_i32, %c0_i32_0 : i32, i32
  }
  func.func @transform_9(%arg0: i32) -> (i32, i32) {
    %c0_i32 = arith.constant 0 : i32
    %c0_i32_0 = arith.constant 0 : i32
    %c0_i32_1 = arith.constant 0 : i32
    return %c0_i32, %c0_i32_0 : i32, i32
  }
  func.func @transform_10(%arg0: i32) -> (i32, i32) {
    %c0_i32 = arith.constant 0 : i32
    %c0_i32_0 = arith.constant 0 : i32
    return %arg0, %c0_i32 : i32, i32
  }
}

</mosaic_0001>

<bundles_post_ra>
// kernel: tpu_custom_call.1
= control target key start
LH: loop header
LB: loop body
LE: loop exit
PB: predicated region body
PF: predicated region fallthrough
CT: control target
= control target key end

     0   :  { %s8844_s0 = inlined_call_operand.vmem [shape: f32[16,8,32], index: 0, kind: input, shape index: {}]   ;;  %s8845_s1 = inlined_call_operand.vmem [shape: f32[16,8,1], index: 1, kind: input, shape index: {}]   ;;  %s8846_s2 = inlined_call_operand.vmem [shape: f32[16,1,8], index: 2, kind: input, shape index: {}]   ;;  %s8847_s3 = inlined_call_operand.vmem [shape: f32[1,32], index: 3, kind: input, shape index: {}]   ;;  %s8848_s4 = inlined_call_operand.vmem [shape: f32[32,96], index: 4, kind: input, shape index: {}]   ;;  %s8849_s5 = inlined_call_operand.vmem [shape: f32[1,96], index: 5, kind: input, shape index: {}]   ;;  %s8850_s6 = inlined_call_operand.hbm [shape: f32[32,32], index: 6, kind: input, shape index: {}]   ;;  %s8851_s7 = inlined_call_operand.vmem [shape: f32[1,32], index: 7, kind: input, shape index: {}]   ;;  %s8852_s8 = inlined_call_operand.vmem [shape: f32[1,32], index: 8, kind: input, shape index: {}]   ;;  %s8853_s9 = inlined_call_operand.<no memory space> [shape: f32[1,1], index: 9, kind: input, shape index: {}]   ;;  %s8854_s10 = inlined_call_operand.hbm [shape: f32[16,32], index: 10, kind: output, shape index: {}]  }
   0x1   :  { %v15_v0 = vstv %s8853_s9 }
   0x2   :  { %16 = vst [vmem:[#allocation3] sm:$0x1] %v15_v0 }
   0x3   :  { %17 = vsyncpa [#allocation5], 0 }
   0x4   :  { %18 = vsyncpa [#allocation6], 0 }
   0x5   :  { %20 = vsyncpa [#allocation6 + $0x1], 0  ;;  %s7757_s14 = smov 0   ;;  %s7759_s15 = smov 0  }
   0x6   :  { %s7761_s16 = smov 0   ;;  %s7763_s17 = smov 0  }
   0x7 LB: > { %s7778_s9 = sadd.s32 4294967295, %s7676_s17   ;;  %s6695_s18 = sadd.s32 4294967294, %s7676_s17   ;;  %s7676_s17 = sphi %s7763_s17, %s8862_s17   ;;  %s7672_s16 = sphi %s7761_s16, %s8861_s16   ;;  %s7668_s15 = sphi %s7759_s15, %s8860_s15   ;;  %s7664_s14 = sphi %s7757_s14, %s8859_s14  }
   0x8   : > { %s7782_s19 = sadd.s32 1, %s7676_s17   ;;  %s258_s20 = sadd.s32 1, %s7672_s16 }
   0x9   : > { %s255_s21 = ssub.s32 %s7676_s17, %s7782_s19  ;;  %p268_p0 = scmp.ne.s32.totalorder %s7672_s16, %s7668_s15 }
   0xa   : > { %p256_p1 = scmp.eq.s32.totalorder %s255_s21, 0  ;;  %p269_p2 = scmp.eq.s32.totalorder %s7778_s9, 1 }
   0xb   : > { %p274_p3 = scmp.ne.s32.totalorder %s7668_s15, %s7664_s14  ;;  %p275_p4 = scmp.eq.s32.totalorder %s6695_s18, 1 }
   0xc   : > { %s7793_s22 = scalar_select %p256_p1, %s7672_s16, %s258_s20  }
   0xd   : > { %p7795_p5 = por %p269_p2, %p268_p0  ;;  %p7799_p6 = por %p275_p4, %p274_p3 }
   0xe   : > { %p6696_p7 = scmp.ge.s32.totalorder %s7676_s17, 1  ;;  %p282_p8 = scmp.lt.s32.totalorder %s7676_s17, 3 }
   0xf   : > { %s8856_s24 = scalar_select %p7799_p6, 1, 0 }
  0x10   : > { %p7353_p9 = scmp.eq.s32.totalorder %s7778_s9, 0  ;;  %p7806_p10 = pnand %p6696_p7, %p282_p8 }
  0x11   : > { %s7678_s26 = smov [#allocation4]  }
  0x12   : > { %s303_s27 = sshll.u32 %s7678_s26, 4  ;;  %p7345_p11 = pneg %p7806_p10  ;;  %s304_s27 = int_to_ptr.vmem [resolvable:$true] %s303_s27 }
  0x13   : > { %s7597_s28 = scalar_lea.vmem %s304_s27, 512  ;;  %p7605_p3 = scmp.lt.s32.totalorder %s304_s27, %s304_s27 }
  0x14   : > { %p7346_p12 = pnand %p7353_p9, %p7345_p11  ;;  %p7598_p0 = scmp.ne.s32.totalorder %s304_s27, %s7597_s28 }
  0x15   : > { %p7606_p4 = scmp.lt.s32.totalorder %s7597_s28, %s7597_s28 }
  0x16   : > { %p7588_p13 = pneg %p7346_p12 }
  0x17   : > { %p7607_p6 = por %p7606_p4, %p7605_p3 }
  0x18   : > { %p7600_p1 = pnand %p7598_p0, %p7588_p13 }
  0x1a   : > { %p7601_p2 = pneg %p7600_p1 }
  0x1c   : > { %p7608_p7 = pnand %p7607_p6, %p7601_p2 }
  0x1e   : > { %7611 = shalt.err (!%p7608_p7)
}
  0x1f   : > { %s7679_s29 = smov 128   ;;  %s7680_s2 = smov 8  }
  0x20   : > { %7348 = dma.hbm_to_vmem [thread:$0]  (!%p7346_p12), %s8850_s6, 512, %s304_s27, [#allocation5], %s7679_s29, %s7679_s29, %s7680_s2  }
  0x21   : > { %354 = sbr.rel (%p7806_p10) target bundleno = 2949 (0xb85), region = 60 }
  0x26   : > { %7655 = dma.done.wait (%p7353_p9), [#allocation5], 512  }
  0x27   : > { %7657 = vsyncadd (%p7353_p9), [#allocation5], 4294966784  ;;  %s6702_s12 = sshll.u32 %s7778_s9, 3  ;;  %v7681_v1 = vmov 0   ;;  %v556_v6 = vld [vmem:[%s8848_s4 + $0x18] sm:$0xff]  ;;  %v555_v9 = vld [vmem:[%s8848_s4 + $0x10] sm:$0xff] }
  0x28   : > { %7409 = vset.pattern.permute.xlu1 %v7681_v1  ;;  %7408 = vset.pattern.permute.xlu0 %v7681_v1  ;;  %p402_p6 = scmp.lt.s32.totalorder %s6702_s12, 15  ;;  %v554_v11 = vld [vmem:[%s8848_s4 + $0x8] sm:$0xff]  ;;  %v553_v14 = vld [vmem:[%s8848_s4] sm:$0xff]  ;;  %vm564_vm0 = vcmask 261120   ;;  %vm7683_vm1 = vmmov 0   ;;  %s7684_s27 = smov 96  }
  0x29   : > { %6979 = vmatprep.subr.mxu0 %v556_v6  ;;  %v6706_v26 = vld [vmem:[%s8847_s3] ss:$0 sm:$0xff]  ;;  %s7685_s28 = smov 64   ;;  %s7686_s29 = smov 88   ;;  %vm697_vm2 = vcmask 64512   ;;  %vm3383_vm3 = vcmask 130112  }
  0x2a   : > { %s8864_s12 = smov (!%p402_p6, %s6702_s12), 15  ;;  %6980 = vmatpush3.msra.mxu0 %v556_v6  ;;  %s7687_s2 = smov 120   ;;  %vm4752_vm4 = vcmask 195712   ;;  %vm6121_vm5 = vcmask 261312   ;;  %vm6356_vm6 = vcmask 7168   ;;  %vm6573_vm7 = vcmask 1041409  }
  0x2b   : > { %s6703_s13 = sshll.u32 %s8864_s12, 3  ;;  %6981 = vmatprep.subr.mxu0 %v555_v9  ;;  %s7688_s30 = smov 56   ;;  %vm6575_vm8 = vcmask 1042434   ;;  %vm6577_vm9 = vcmask 1043459   ;;  %vm6579_vm10 = vcmask 1044484   ;;  %vm6581_vm11 = vcmask 1045509  }
  0x2c   : > { %s7832_s21 = scalar_lea.vmem %s8845_s1, %s6703_s13  ;;  %6982 = vmatpush3.msra.mxu0 %v555_v9  ;;  %s7859_s25 = scalar_lea.vmem %s8844_s0, %s6703_s13  ;;  %v6707_v9 = vld [vmem:[%s8849_s5] ss:$0 sm:$0xff]  ;;  %vm6583_vm12 = vcmask 1046534   ;;  %vm6585_vm13 = vcmask 1047559  }
  0x2d   : > { %v427_v2 = vld [vmem:[%s7832_s21 + $0x8] sm:$0xff]  ;;  %v426_v3 = vld [vmem:[%s7832_s21] sm:$0xff]  ;;  %v428_v5 = vld [vmem:[%s7832_s21 + $0x10] sm:$0xff]  ;;  %6983 = vmatprep.subr.mxu0 %v554_v11  ;;  %s7689_s11 = smov 80   ;;  %s7690_s18 = smov 112  }
  0x2e   : > { %442 = vperm.xlu1 %7409, %v427_v2   ;;  %v484_v4 = vsub.f32 1.0, %v427_v2  ;;  %437 = vperm.xlu0 %7408, %v426_v3   ;;  %v483_v7 = vsub.f32 1.0, %v426_v3  ;;  %v485_v8 = vsub.f32 1.0, %v428_v5  ;;  %v429_v10 = vld [vmem:[%s7832_s21 + $0x18] sm:$0xff]  ;;  %v430_v13 = vld [vmem:[%s7832_s21 + $0x20] sm:$0xff]  ;;  %v431_v16 = vld [vmem:[%s7832_s21 + $0x28] sm:$0xff] }
  0x2f   : > { %v486_v12 = vsub.f32 1.0, %v429_v10  ;;  %6984 = vmatpush3.msra.mxu0 %v554_v11  ;;  %v487_v15 = vsub.f32 1.0, %v430_v13  ;;  %v488_v17 = vsub.f32 1.0, %v431_v16  ;;  %v432_v18 = vld [vmem:[%s7832_s21 + $0x30] sm:$0xff]  ;;  %v433_v20 = vld [vmem:[%s7832_s21 + $0x38] sm:$0xff]  ;;  %v418_v27 = vld [vmem:[%s7859_s25] sm:$0xff] }
  0x30   : > { %6985 = vmatprep.subr.mxu0 %v553_v14  ;;  %v489_v19 = vsub.f32 1.0, %v432_v18  ;;  %v490_v21 = vsub.f32 1.0, %v433_v20  ;;  %v419_v28 = vld [vmem:[%s7859_s25 + $0x8] sm:$0xff]  ;;  %v420_v30 = vld [vmem:[%s7859_s25 + $0x10] sm:$0xff]  ;;  %v421_v37 = vld [vmem:[%s7859_s25 + $0x18] sm:$0xff]  ;;  %s7691_s20 = smov 48  }
  0x31   : > { %6986 = vmatpush3.msra.mxu0 %v553_v14  ;;  %v422_v46 = vld [vmem:[%s7859_s25 + $0x20] sm:$0xff]  ;;  %v423_v52 = vld [vmem:[%s7859_s25 + $0x28] sm:$0xff]  ;;  %v424_v58 = vld [vmem:[%s7859_s25 + $0x30] sm:$0xff]  ;;  %s7693_s21 = smov 104   ;;  %s7694_s26 = smov 40  }
  0x32   : > { %504 = vperm.xlu1 %7409, %v484_v4   ;;  %447 = vperm.xlu0 %7408, %v428_v5   ;;  %v425_v0 = vld [vmem:[%s7859_s25 + $0x38] sm:$0xff]  ;;  %s7692_s25 = smov 72   ;;  %s7695_s12 = smov 8  }
  0x33   : > { %s7696_s13 = smov 16  }
  0x36   : > { %509 = vperm.xlu1 %7409, %v485_v8   ;;  %499 = vperm.xlu0 %7408, %v483_v7   ;;  %v7682_v7 = vmov 0.0  }
  0x37   : > { %6999 = vmatprep.subr.mxu0 %v7682_v7  ;;  %7009 = vmatprep.subr.mxu1 %v7682_v7 }
  0x38   : > { %7011 = vmatprep.mubr.msk.f32.mxu1 %vm7683_vm1, %v7682_v7 }
  0x3a   : > { %514 = vperm.xlu1 %7409, %v486_v12   ;;  %452 = vperm.xlu0 %7408, %v429_v10  }
  0x3e   : > { %519 = vperm.xlu1 %7409, %v487_v15   ;;  %457 = vperm.xlu0 %7408, %v430_v13  }
  0x42   : > { %524 = vperm.xlu1 %7409, %v488_v17   ;;  %462 = vperm.xlu0 %7408, %v431_v16  }
  0x46   : > { %529 = vperm.xlu1 %7409, %v489_v19   ;;  %467 = vperm.xlu0 %7408, %v432_v18  }
  0x4a   : > { %534 = vperm.xlu1 %7409, %v490_v21   ;;  %472 = vperm.xlu0 %7408, %v433_v20  }
  0xa9   : > { %v443_v22 = vpop.permute.xlu1 %442  ;;  %v438_v23 = vpop.permute.xlu0 %437 }
  0xaa   : > { %v475_v33 = vmul.f32 %v438_v23, %v418_v27  ;;  %v476_v36 = vmul.f32 %v443_v22, %v419_v28 }
  0xad   : > { %v505_v24 = vpop.permute.xlu1 %504  ;;  %v448_v25 = vpop.permute.xlu0 %447 }
  0xae   : > { %v538_v29 = vmul.f32 %v6706_v26, %v505_v24  ;;  %v477_v38 = vmul.f32 %v448_v25, %v420_v30 }
  0xb0   : > { %v546_v40 = vadd.f32 %v538_v29, %v476_v36 }
  0xb1   : > { %v510_v31 = vpop.permute.xlu1 %509  ;;  %v500_v32 = vpop.permute.xlu0 %499 }
  0xb2   : > { %v539_v34 = vmul.f32 %v6706_v26, %v510_v31  ;;  %v537_v35 = vmul.f32 %v6706_v26, %v500_v32 }
  0xb4   : > { %v545_v39 = vadd.f32 %v537_v35, %v475_v33  ;;  %v547_v43 = vadd.f32 %v539_v34, %v477_v38 }
  0xb5   : > { %v515_v41 = vpop.permute.xlu1 %514  ;;  %v453_v42 = vpop.permute.xlu0 %452 }
  0xb6   : > { %v540_v44 = vmul.f32 %v6706_v26, %v515_v41  ;;  %v478_v45 = vmul.f32 %v453_v42, %v421_v37  ;;  %6987 = vmatprep.mubr.msk.f32.mxu0 %vm564_vm0, %v545_v39 }
  0xb7   : > { %6988 = vmatmul.mubr.msk.f32.vlgmr.msra.gmra.mxu0 %vm564_vm0, %v546_v40 }
  0xb8   : > { %v548_v47 = vadd.f32 %v540_v44, %v478_v45  ;;  %6990 = vmatprep.mubr.msk.f32.mxu0 %vm564_vm0, %v547_v43 }
  0xb9   : > { %v520_v48 = vpop.permute.xlu1 %519  ;;  %v458_v49 = vpop.permute.xlu0 %457 }
  0xba   : > { %v541_v50 = vmul.f32 %v6706_v26, %v520_v48  ;;  %v479_v51 = vmul.f32 %v458_v49, %v422_v46 }
  0xbb   : > { %6991 = vmatmul.mubr.msk.f32.gmra.mxu0 %vm564_vm0, %v548_v47 }
  0xbc   : > { %v549_v53 = vadd.f32 %v541_v50, %v479_v51 }
  0xbd   : > { %v525_v54 = vpop.permute.xlu1 %524  ;;  %v463_v55 = vpop.permute.xlu0 %462 }
  0xbe   : > { %v542_v56 = vmul.f32 %v6706_v26, %v525_v54  ;;  %v480_v57 = vmul.f32 %v463_v55, %v423_v52  ;;  %6993 = vmatprep.mubr.msk.f32.mxu0 %vm564_vm0, %v549_v53 }
  0xc0   : > { %v550_v59 = vadd.f32 %v542_v56, %v480_v57 }
  0xc1   : > { %v530_v60 = vpop.permute.xlu1 %529  ;;  %v468_v61 = vpop.permute.xlu0 %467 }
  0xc2   : > { %v543_v62 = vmul.f32 %v6706_v26, %v530_v60  ;;  %v481_v63 = vmul.f32 %v468_v61, %v424_v58  ;;  %6994 = vmatmul.mubr.msk.f32.gmra.mxu0 %vm564_vm0, %v550_v59 }
  0xc4   : > { %v551_v1 = vadd.f32 %v543_v62, %v481_v63 }
  0xc5   : > { %v535_v2 = vpop.permute.xlu1 %534  ;;  %v473_v3 = vpop.permute.xlu0 %472 }
  0xc6   : > { %v544_v4 = vmul.f32 %v6706_v26, %v535_v2  ;;  %v482_v5 = vmul.f32 %v473_v3, %v425_v0  ;;  %6996 = vmatprep.mubr.msk.f32.mxu0 %vm564_vm0, %v551_v1 }
  0xc8   : > { %v552_v6 = vadd.f32 %v544_v4, %v482_v5 }
  0xca   : > { %6997 = vmatmul.mubr.msk.f32.gmra.mxu0 %vm564_vm0, %v552_v6 }
  0xcb   : > { %7001 = vmatprep.mubr.msk.f32.mxu0 %vm7683_vm1, %v7682_v7 }
 0x177   : > { %v6989_v8 = vpop.f32.mrf.mxu0 }
 0x178   : > { %v7892_v14 = vadd.f32 %v6989_v8, %v6707_v9 }
 0x179   : > { %v655_v10 = vpop.f32.mrf.mxu0 }
 0x17a   : > { %v7889_v11 = vadd.f32 %v6707_v9, %v655_v10 }
 0x17b   : > { %v6992_v12 = vpop.f32.mrf.mxu0 }
 0x17c   : > { %695 = vrot.lane.b32.xlu0 %v7889_v11, %s7684_s27  ;;  %v7898_v16 = vadd.f32 %v6992_v12, %v6707_v9 }
 0x17d   : > { %v665_v13 = vpop.f32.mrf.mxu0 }
 0x17e   : > { %v7894_v15 = vadd.f32 %v6707_v9, %v665_v13 }
 0x180   : > { %850 = vrot.lane.b32.xlu1 %v7894_v15, %s7684_s27  ;;  %773 = vrot.lane.b32.xlu0 %v7892_v14, %s7684_s27 }
 0x182   : > { %v6995_v17 = vpop.f32.mrf.mxu0 }
 0x183   : > { %v7903_v20 = vadd.f32 %v6995_v17, %v6707_v9 }
 0x184   : > { %v675_v18 = vpop.f32.mrf.mxu0  ;;  %927 = vrot.lane.b32.xlu1 %v7898_v16, %s7684_s27 }
 0x185   : > { %v7901_v19 = vadd.f32 %v6707_v9, %v675_v18 }
 0x187   : > { %1004 = vrot.lane.b32.xlu0 %v7901_v19, %s7684_s27 }
 0x188   : > { %1081 = vrot.lane.b32.xlu1 %v7903_v20, %s7684_s27 }
 0x18a   : > { %v6998_v21 = vpop.f32.mrf.mxu0 }
 0x18b   : > { %v7907_v22 = vadd.f32 %v6998_v21, %v6707_v9 }
 0x18c   : > { %v685_v23 = vpop.f32.mrf.mxu0 }
 0x18d   : > { %v7909_v24 = vadd.f32 %v6707_v9, %v685_v23  ;;  %1235 = vrot.lane.b32.xlu1 %v7907_v22, %s7684_s27 }
 0x18f   : > { %1158 = vrot.lane.b32.xlu0 %v7909_v24, %s7684_s27  ;;  %s7697_s27 = smov 24  }
 0x191   : > { %1407 = vrot.lane.b32.xlu1 %v7889_v11, %s7685_s28 }
 0x193   : > { %1483 = vrot.lane.b32.xlu0 %v7892_v14, %s7685_s28 }
 0x195   : > { %1559 = vrot.lane.b32.xlu1 %v7894_v15, %s7685_s28 }
 0x197   : > { %1711 = vrot.lane.b32.xlu0 %v7901_v19, %s7685_s28 }
 0x199   : > { %1635 = vrot.lane.b32.xlu1 %v7898_v16, %s7685_s28 }
 0x19b   : > { %2025 = vrot.lane.b32.xlu0 %v7889_v11, %s7686_s29 }
 0x19d   : > { %1787 = vrot.lane.b32.xlu1 %v7903_v20, %s7685_s28 }
 0x19f   : > { %2023 = vrot.lane.b32.xlu0 %v7889_v11, %s7687_s2 }
 0x1a1   : > { %1939 = vrot.lane.b32.xlu1 %v7907_v22, %s7685_s28 }
 0x1a3   : > { %1863 = vrot.lane.b32.xlu0 %v7909_v24, %s7685_s28 }
 0x1a5   : > { %2103 = vrot.lane.b32.xlu1 %v7892_v14, %s7686_s29 }
 0x1a9   : > { %2101 = vrot.lane.b32.xlu1 %v7892_v14, %s7687_s2 }
 0x1ee   : > { %v696_v25 = vpop.permute.xlu0 %695 }
 0x1ef   : > { %7000 = vmatpush3.xpose.msk.msra.mxu0 %vm697_vm2, %v696_v25 }
 0x1f0   : > { %7004 = vmatprep.subr.mxu0 %v7682_v7 }
 0x1f2   : > { %v851_v26 = vpop.permute.xlu1 %850  ;;  %7002 = vmatmul.mubr.msk.f32.vlgmr.msra.gmra.mxu0 %vm697_vm2, %v7889_v11  ;;  %v774_v27 = vpop.permute.xlu0 %773 }
 0x1f3   : > { %7005 = vmatpush3.xpose.msk.msra.mxu0 %vm697_vm2, %v774_v27  ;;  %7010 = vmatpush3.xpose.msk.msra.mxu1 %vm697_vm2, %v851_v26 }
 0x1f4   : > { %7006 = vmatprep.mubr.msk.f32.mxu0 %vm7683_vm1, %v7682_v7  ;;  %7014 = vmatprep.subr.mxu1 %v7682_v7 }
 0x1f5   : > { %7024 = vmatprep.subr.mxu0 %v7682_v7 }
 0x1f6   : > { %7012 = vmatmul.mubr.msk.f32.vlgmr.msra.gmra.mxu1 %vm697_vm2, %v7894_v15  ;;  %v928_v28 = vpop.permute.xlu1 %927  ;;  %7007 = vmatmul.mubr.msk.f32.vlgmr.msra.gmra.mxu0 %vm697_vm2, %v7892_v14 }
 0x1f7   : > { %7015 = vmatpush3.xpose.msk.msra.mxu1 %vm697_vm2, %v928_v28  ;;  %7016 = vmatprep.mubr.msk.f32.mxu1 %vm7683_vm1, %v7682_v7 }
 0x1f8   : > { %7019 = vmatprep.subr.mxu1 %v7682_v7  ;;  %7026 = vmatprep.mubr.msk.f32.mxu0 %vm7683_vm1, %v7682_v7 }
 0x1f9   : > { %v1005_v29 = vpop.permute.xlu0 %1004 }
 0x1fa   : > { %7017 = vmatmul.mubr.msk.f32.vlgmr.msra.gmra.mxu1 %vm697_vm2, %v7898_v16  ;;  %v1082_v30 = vpop.permute.xlu1 %1081 }
 0x1fb   : > { %7020 = vmatpush3.xpose.msk.msra.mxu1 %vm697_vm2, %v1005_v29  ;;  %7025 = vmatpush3.xpose.msk.msra.mxu0 %vm697_vm2, %v1082_v30 }
 0x1fc   : > { %7021 = vmatprep.mubr.msk.f32.mxu1 %vm7683_vm1, %v7682_v7  ;;  %7034 = vmatprep.subr.mxu0 %v7682_v7 }
 0x1fd   : > { %7029 = vmatprep.subr.mxu1 %v7682_v7 }
 0x1fe   : > { %7022 = vmatmul.mubr.msk.f32.vlgmr.msra.gmra.mxu1 %vm697_vm2, %v7901_v19  ;;  %7027 = vmatmul.mubr.msk.f32.vlgmr.msra.gmra.mxu0 %vm697_vm2, %v7903_v20 }
 0x1ff   : > { %v1236_v31 = vpop.permute.xlu1 %1235  ;;  %7036 = vmatprep.mubr.msk.f32.mxu0 %vm7683_vm1, %v7682_v7  ;;  %7031 = vmatprep.mubr.msk.f32.mxu1 %vm7683_vm1, %v7682_v7 }
 0x200   : > { %7035 = vmatpush3.xpose.msk.msra.mxu0 %vm697_vm2, %v1236_v31 }
 0x201   : > { %v1159_v32 = vpop.permute.xlu0 %1158  ;;  %7044 = vmatprep.subr.mxu0 %v7682_v7 }
 0x202   : > { %7030 = vmatpush3.xpose.msk.msra.mxu1 %vm697_vm2, %v1159_v32 }
 0x203   : > { %7037 = vmatmul.mubr.msk.f32.vlgmr.msra.gmra.mxu0 %vm697_vm2, %v7907_v22  ;;  %7039 = vmatprep.subr.mxu1 %v7682_v7  ;;  %v1408_v33 = vpop.permute.xlu1 %1407 }
 0x204   : > { %7046 = vmatprep.mubr.msk.f32.mxu0 %vm7683_vm1, %v7682_v7 }
 0x205   : > { %7032 = vmatmul.mubr.msk.f32.vlgmr.msra.gmra.mxu1 %vm697_vm2, %v7909_v24  ;;  %v1484_v34 = vpop.permute.xlu0 %1483 }
 0x206   : > { %7040 = vmatpush3.msra.mxu1 %v1408_v33  ;;  %7045 = vmatpush3.msra.mxu0 %v1484_v34 }
 0x207   : > { %7041 = vmatprep.mubr.msk.f32.mxu1 %vm7683_vm1, %v7682_v7  ;;  %7049 = vmatprep.subr.mxu1 %v7682_v7  ;;  %v1560_v28 = vpop.permute.xlu1 %1559 }
 0x208   : > { %7054 = vmatprep.subr.mxu0 %v7682_v7 }
 0x209   : > { %v8053_v30 = vpop.permute.xlu0 %1711 }
 0x20b   : > { %v8051_v29 = vpop.permute.xlu1 %1635 }
 0x20d   : > { %v8057_v32 = vpop.permute.xlu0 %2025 }
 0x20f   : > { %v8055_v31 = vpop.permute.xlu1 %1787 }
 0x211   : > { %v8061_v34 = vpop.permute.xlu0 %2023 }
 0x213   : > { %v8059_v33 = vpop.permute.xlu1 %1939 }
 0x2b2   : > { %v768_v35 = vpop.f32.mrf.mxu0 }
 0x2b3   : > { %v1311_v36 = vmul.f32 0.35355338, %v768_v35  ;;  %v8063_v35 = vpop.permute.xlu1 %2103 }
 0x2b4   : > { %v7003_v37 = vpop.f32.mrf.mxu0 }
 0x2b5   : > { %v1319_v38 = vmul.f32 1.442695, %v1311_v36  ;;  %v8065_v36 = vpop.permute.xlu0 %1863 }
 0x2b6   : > { %v845_v39 = vpop.f32.mrf.mxu0  ;;  %v922_v40 = vpop.f32.mrf.mxu1 }
 0x2b7   : > { %7410 = vpow2.f32 %v1319_v38  ;;  %v1312_v41 = vmul.f32 0.35355338, %v845_v39  ;;  %v1313_v42 = vmul.f32 0.35355338, %v922_v40  ;;  %v8067_v37 = vpop.permute.xlu1 %2101 }
 0x2b8   : > { %v7008_v43 = vpop.f32.mrf.mxu0  ;;  %v7013_v44 = vpop.f32.mrf.mxu1 }
 0x2b9   : > { %v1321_v45 = vmul.f32 1.442695, %v1312_v41  ;;  %v1323_v46 = vmul.f32 1.442695, %v1313_v42 }
 0x2ba   : > { %v999_v47 = vpop.f32.mrf.mxu1 }
 0x2bb   : > { %7412 = vpow2.f32 %v1321_v45  ;;  %v1314_v48 = vmul.f32 0.35355338, %v999_v47 }
 0x2bc   : > { %7414 = vpow2.f32 %v1323_v46  ;;  %v7018_v49 = vpop.f32.mrf.mxu1 }
 0x2bd   : > { %v1325_v50 = vmul.f32 1.442695, %v1314_v48 }
 0x2be   : > { %v1076_v51 = vpop.f32.mrf.mxu1  ;;  %v1153_v52 = vpop.f32.mrf.mxu0 }
 0x2bf   : > { %7416 = vpow2.f32 %v1325_v50  ;;  %v1315_v53 = vmul.f32 0.35355338, %v1076_v51  ;;  %v1316_v54 = vmul.f32 0.35355338, %v1153_v52 }
 0x2c0   : > { %v7023_v55 = vpop.f32.mrf.mxu1  ;;  %v7028_v56 = vpop.f32.mrf.mxu0 }
 0x2c1   : > { %v1327_v57 = vmul.f32 1.442695, %v1315_v53  ;;  %v1329_v58 = vmul.f32 1.442695, %v1316_v54 }
 0x2c3   : > { %7418 = vpow2.f32 %v1327_v57  ;;  %v1307_v59 = vpop.f32.mrf.mxu0 }
 0x2c4   : > { %v7979_v60 = vpop.eup %7410  ;;  %7420 = vpow2.f32 %v1329_v58  ;;  %v1318_v61 = vmul.f32 0.35355338, %v1307_v59 }
 0x2c5   : > { %v1230_v62 = vpop.f32.mrf.mxu1  ;;  %v7038_v63 = vpop.f32.mrf.mxu0  ;;  %v1335_v0 = vsel %vm697_vm2, %v7979_v60, 0.0 }
 0x2c6   : > { %v1333_v1 = vmul.f32 1.442695, %v1318_v61  ;;  %v1317_v2 = vmul.f32 0.35355338, %v1230_v62  ;;  %1336 = vadd.xlane.f32.xlu0 %v1335_v0 }
 0x2c7   : > { %v7033_v3 = vpop.f32.mrf.mxu1 }
 0x2c8   : > { %v7983_v4 = vpop.eup %7412  ;;  %7422 = vpow2.f32 %v1333_v1  ;;  %v1331_v5 = vmul.f32 1.442695, %v1317_v2 }
 0x2c9   : > { %v7985_v6 = vpop.eup %7414  ;;  %v1338_v8 = vsel %vm697_vm2, %v7983_v4, 0.0 }
 0x2ca   : > { %7424 = vpow2.f32 %v1331_v5  ;;  %v1341_v9 = vsel %vm697_vm2, %v7985_v6, 0.0  ;;  %1339 = vadd.xlane.f32.xlu1 %v1338_v8 }
 0x2cb   : > { %1342 = vadd.xlane.f32.xlu0 %v1341_v9 }
 0x2cc   : > { %v7991_v10 = vpop.eup %7416 }
 0x2cd   : > { %v1344_v12 = vsel %vm697_vm2, %v7991_v10, 0.0 }
 0x2cf   : > { %1345 = vadd.xlane.f32.xlu0 %v1344_v12 }
 0x2d0   : > { %v7995_v13 = vpop.eup %7418 }
 0x2d1   : > { %v7997_v17 = vpop.eup %7420  ;;  %v1347_v18 = vsel %vm697_vm2, %v7995_v13, 0.0 }
 0x2d2   : > { %v1350_v21 = vsel %vm697_vm2, %v7997_v17, 0.0  ;;  %1348 = vadd.xlane.f32.xlu1 %v1347_v18 }
 0x2d3   : > { %1351 = vadd.xlane.f32.xlu0 %v1350_v21 }
 0x2d5   : > { %v8003_v23 = vpop.eup %7422 }
 0x2d6   : > { %v1356_v25 = vsel %vm697_vm2, %v8003_v23, 0.0 }
 0x2d7   : > { %v8007_v26 = vpop.eup %7424  ;;  %1357 = vadd.xlane.f32.xlu0 %v1356_v25 }
 0x2d8   : > { %v1353_v27 = vsel %vm697_vm2, %v8007_v26, 0.0 }
 0x2d9   : > { %1354 = vadd.xlane.f32.xlu1 %v1353_v27 }
 0x2ea   : > { %2259 = vrot.lane.b32.xlu1 %v7898_v16, %s7686_s29 }
 0x2ed   : > { %2181 = vrot.lane.b32.xlu0 %v7894_v15, %s7686_s29 }
 0x2ee   : > { %2257 = vrot.lane.b32.xlu1 %v7898_v16, %s7687_s2 }
 0x2f1   : > { %2179 = vrot.lane.b32.xlu0 %v7894_v15, %s7687_s2 }
 0x2f2   : > { %2415 = vrot.lane.b32.xlu1 %v7903_v20, %s7686_s29 }
 0x2f5   : > { %2337 = vrot.lane.b32.xlu0 %v7901_v19, %s7686_s29 }
 0x2f6   : > { %2413 = vrot.lane.b32.xlu1 %v7903_v20, %s7687_s2 }
 0x2f9   : > { %2335 = vrot.lane.b32.xlu0 %v7901_v19, %s7687_s2 }
 0x2fa   : > { %2571 = vrot.lane.b32.xlu1 %v7907_v22, %s7686_s29 }
 0x2fd   : > { %2493 = vrot.lane.b32.xlu0 %v7909_v24, %s7686_s29 }
 0x2fe   : > { %2569 = vrot.lane.b32.xlu1 %v7907_v22, %s7687_s2 }
 0x301   : > { %2491 = vrot.lane.b32.xlu0 %v7909_v24, %s7687_s2 }
 0x302   : > { %2743 = vrot.lane.b32.xlu1 %v7889_v11, %s7688_s30 }
 0x305   : > { %2819 = vrot.lane.b32.xlu0 %v7892_v14, %s7688_s30 }
 0x306   : > { %2895 = vrot.lane.b32.xlu1 %v7894_v15, %s7688_s30 }
 0x309   : > { %3047 = vrot.lane.b32.xlu0 %v7901_v19, %s7688_s30 }
 0x30a   : > { %2971 = vrot.lane.b32.xlu1 %v7898_v16, %s7688_s30 }
 0x30d   : > { %3199 = vrot.lane.b32.xlu0 %v7909_v24, %s7688_s30 }
 0x30e   : > { %3123 = vrot.lane.b32.xlu1 %v7903_v20, %s7688_s30 }
 0x311   : > { %3394 = vrot.lane.b32.xlu0 %v7889_v11, %s7689_s11 }
 0x312   : > { %3275 = vrot.lane.b32.xlu1 %v7907_v22, %s7688_s30 }
 0x315   : > { %3392 = vrot.lane.b32.xlu0 %v7889_v11, %s7690_s18 }
 0x316   : > { %3472 = vrot.lane.b32.xlu1 %v7892_v14, %s7689_s11 }
 0x31a   : > { %3470 = vrot.lane.b32.xlu1 %v7892_v14, %s7690_s18 }
 0x34f   : > { %v1337_v38 = vpop.xlane.xlu0 %1336 }
 0x350   : > { %v1359_v39 = vadd.f32 1e-08, %v1337_v38 }
 0x352   : > { %7426 = vrcp.f32 %v1359_v39 }
 0x353   : > { %v1340_v40 = vpop.xlane.xlu1 %1339 }
 0x354   : > { %v1360_v41 = vadd.f32 1e-08, %v1340_v40  ;;  %v1343_v42 = vpop.xlane.xlu0 %1342 }
 0x355   : > { %v1361_v43 = vadd.f32 1e-08, %v1343_v42 }
 0x356   : > { %7428 = vrcp.f32 %v1360_v41 }
 0x357   : > { %7430 = vrcp.f32 %v1361_v43 }
 0x358   : > { %v1346_v44 = vpop.xlane.xlu0 %1345 }
 0x359   : > { %v1362_v45 = vadd.f32 1e-08, %v1346_v44 }
 0x35b   : > { %7432 = vrcp.f32 %v1362_v45  ;;  %v1349_v46 = vpop.xlane.xlu1 %1348 }
 0x35c   : > { %v1363_v47 = vadd.f32 1e-08, %v1349_v46  ;;  %v1352_v48 = vpop.xlane.xlu0 %1351 }
 0x35d   : > { %v1364_v49 = vadd.f32 1e-08, %v1352_v48 }
 0x35e   : > { %7434 = vrcp.f32 %v1363_v47 }
 0x35f   : > { %v7427_v50 = vpop.eup %7426  ;;  %7436 = vrcp.f32 %v1364_v49 }
 0x360   : > { %v1375_v51 = vmul.f32 %v7427_v50, %v1359_v39  ;;  %v1358_v52 = vpop.xlane.xlu0 %1357 }
 0x361   : > { %v1366_v53 = vadd.f32 1e-08, %v1358_v52 }
 0x362   : > { %v1383_v54 = vsub.f32 2.0, %v1375_v51  ;;  %v1355_v55 = vpop.xlane.xlu1 %1354 }
 0x363   : > { %v7429_v56 = vpop.eup %7428  ;;  %7438 = vrcp.f32 %v1366_v53  ;;  %v1365_v57 = vadd.f32 1e-08, %v1355_v55 }
 0x364   : > { %v7431_v58 = vpop.eup %7430  ;;  %v1391_v59 = vmul.f32 %v7427_v50, %v1383_v54  ;;  %v1376_v61 = vmul.f32 %v7429_v56, %v1360_v41  ;;  %v8069_v63 = vpop.permute.xlu0 %2181 }
 0x365   : > { %v1377_v62 = vmul.f32 %v7431_v58, %v1361_v43  ;;  %7440 = vrcp.f32 %v1365_v57 }
 0x366   : > { %v1399_v0 = vmul.f32 %v7979_v60, %v1391_v59  ;;  %v1384_v1 = vsub.f32 2.0, %v1376_v61  ;;  %v8072_v3 = vpop.permute.xlu1 %2259 }
 0x367   : > { %v1385_v2 = vsub.f32 2.0, %v1377_v62 }
 0x368   : > { %v7433_v5 = vpop.eup %7432  ;;  %v1392_v8 = vmul.f32 %v7429_v56, %v1384_v1  ;;  %7042 = vmatmul.mubr.msk.f32.vlgmr.msra.gmra.mxu1 %vm697_vm2, %v1399_v0  ;;  %v8080_v27 = vpop.permute.xlu0 %2179 }
 0x369   : > { %v1393_v9 = vmul.f32 %v7431_v58, %v1385_v2  ;;  %v1378_v12 = vmul.f32 %v7433_v5, %v1362_v45  ;;  %7050 = vmatpush3.msra.mxu1 %v1560_v28  ;;  %7051 = vmatprep.mubr.msk.f32.mxu1 %vm7683_vm1, %v7682_v7 }
 0x36a   : > { %v1400_v18 = vmul.f32 %v7983_v4, %v1392_v8  ;;  %7059 = vmatprep.subr.mxu1 %v7682_v7  ;;  %v2258_v28 = vpop.permute.xlu1 %2257 }
 0x36b   : > { %v7435_v21 = vpop.eup %7434  ;;  %v1401_v60 = vmul.f32 %v7985_v6, %v1393_v9  ;;  %v1386_v25 = vsub.f32 2.0, %v1378_v12 }
 0x36c   : > { %v7437_v38 = vpop.eup %7436  ;;  %v1379_v39 = vmul.f32 %v7435_v21, %v1363_v47  ;;  %7047 = vmatmul.mubr.msk.f32.vlgmr.msra.gmra.mxu0 %vm697_vm2, %v1400_v18  ;;  %v2338_v46 = vpop.permute.xlu0 %2337 }
 0x36d   : > { %v1394_v40 = vmul.f32 %v7433_v5, %v1386_v25  ;;  %v1380_v41 = vmul.f32 %v7437_v38, %v1364_v49  ;;  %7052 = vmatmul.mubr.msk.f32.vlgmr.msra.gmra.mxu1 %vm697_vm2, %v1401_v60  ;;  %7055 = vmatpush3.msra.mxu0 %v8051_v29 }
 0x36e   : > { %v1387_v4 = vsub.f32 2.0, %v1379_v39  ;;  %7060 = vmatpush3.msra.mxu1 %v8053_v30  ;;  %7056 = vmatprep.mubr.msk.f32.mxu0 %vm7683_vm1, %v7682_v7  ;;  %v2416_v50 = vpop.permute.xlu1 %2415 }
 0x36f   : > { %v1402_v6 = vmul.f32 %v7991_v10, %v1394_v40  ;;  %v1388_v42 = vsub.f32 2.0, %v1380_v41  ;;  %7064 = vmatprep.subr.mxu0 %v7682_v7  ;;  %7061 = vmatprep.mubr.msk.f32.mxu1 %vm7683_vm1, %v7682_v7 }
 0x370   : > { %v7439_v43 = vpop.eup %7438  ;;  %v1395_v44 = vmul.f32 %v7435_v21, %v1387_v4  ;;  %7069 = vmatprep.subr.mxu1 %v7682_v7 }
 0x371   : > { %v1396_v45 = vmul.f32 %v7437_v38, %v1388_v42  ;;  %v1382_v29 = vmul.f32 %v7439_v43, %v1366_v53  ;;  %7057 = vmatmul.mubr.msk.f32.vlgmr.msra.gmra.mxu0 %vm697_vm2, %v1402_v6 }
 0x372   : > { %v7441_v30 = vpop.eup %7440  ;;  %v1403_v47 = vmul.f32 %v7995_v13, %v1395_v44  ;;  %7065 = vmatpush3.msra.mxu0 %v8055_v31  ;;  %7066 = vmatprep.mubr.msk.f32.mxu0 %vm7683_vm1, %v7682_v7  ;;  %v2336_v31 = vpop.permute.xlu0 %2335 }
 0x373   : > { %v1404_v10 = vmul.f32 %v7997_v17, %v1396_v45  ;;  %v1390_v48 = vsub.f32 2.0, %v1382_v29  ;;  %v1381_v49 = vmul.f32 %v7441_v30, %v1365_v57  ;;  %7074 = vmatprep.subr.mxu0 %v7682_v7  ;;  %v2414_v54 = vpop.permute.xlu1 %2413 }
 0x374   : > { %7062 = vmatmul.mubr.msk.f32.vlgmr.msra.gmra.mxu1 %vm697_vm2, %v1403_v47 }
 0x375   : > { %v1398_v51 = vmul.f32 %v7439_v43, %v1390_v48  ;;  %v1389_v52 = vsub.f32 2.0, %v1381_v49  ;;  %7067 = vmatmul.mubr.msk.f32.vlgmr.msra.gmra.mxu0 %vm697_vm2, %v1404_v10  ;;  %7070 = vmatpush3.msra.mxu1 %v8065_v36 }
 0x376   : > { %7075 = vmatpush3.msra.mxu0 %v8059_v33  ;;  %7076 = vmatprep.mubr.msk.f32.mxu0 %vm7683_vm1, %v7682_v7 }
 0x377   : > { %v1406_v13 = vmul.f32 %v8003_v23, %v1398_v51  ;;  %v1397_v17 = vmul.f32 %v7441_v30, %v1389_v52  ;;  %7084 = vmatprep.subr.mxu0 %v7682_v7  ;;  %7071 = vmatprep.mubr.msk.f32.mxu1 %vm7683_vm1, %v7682_v7  ;;  %v2494_v23 = vpop.permute.xlu0 %2493 }
 0x378   : > { %7079 = vmatprep.subr.mxu1 %v7682_v7 }
 0x379   : > { %v1405_v53 = vmul.f32 %v8007_v26, %v1397_v17  ;;  %7077 = vmatmul.mubr.msk.f32.vlgmr.msra.gmra.mxu0 %vm697_vm2, %v1406_v13  ;;  %v2572_v26 = vpop.permute.xlu1 %2571 }
 0x37a   : > { %7085 = vmatpush3.xpose.msk.msra.mxu0 %vm697_vm2, %v8063_v35  ;;  %7086 = vmatprep.mubr.msk.f32.mxu0 %vm7683_vm1, %v7682_v7 }
 0x37b   : > { %7072 = vmatmul.mubr.msk.f32.vlgmr.msra.gmra.mxu1 %vm697_vm2, %v1405_v53  ;;  %7094 = vmatprep.subr.mxu0 %v7682_v7 }
 0x37c   : > { %7080 = vmatpush3.xpose.msk.msra.mxu1 %vm697_vm2, %v8057_v32  ;;  %7081 = vmatprep.mubr.msk.f32.mxu1 %vm7683_vm1, %v7682_v7  ;;  %v2492_v32 = vpop.permute.xlu0 %2491 }
 0x37d   : > { %7087 = vmatmul.mubr.msk.f32.vlgmr.msra.gmra.mxu0 %vm697_vm2, %v8067_v37  ;;  %7089 = vmatprep.subr.mxu1 %v7682_v7  ;;  %v2570_v33 = vpop.permute.xlu1 %2569 }
 0x37e   : > { %7095 = vmatpush3.xpose.msk.msra.mxu0 %vm697_vm2, %v8072_v3  ;;  %7096 = vmatprep.mubr.msk.f32.mxu0 %vm7683_vm1, %v7682_v7 }
 0x37f   : > { %7082 = vmatmul.mubr.msk.f32.vlgmr.msra.gmra.mxu1 %vm697_vm2, %v8061_v34  ;;  %7104 = vmatprep.subr.mxu0 %v7682_v7 }
 0x380   : > { %7090 = vmatpush3.xpose.msk.msra.mxu1 %vm697_vm2, %v8069_v63  ;;  %7091 = vmatprep.mubr.msk.f32.mxu1 %vm7683_vm1, %v7682_v7  ;;  %v2820_v34 = vpop.permute.xlu0 %2819 }
 0x381   : > { %7097 = vmatmul.mubr.msk.f32.vlgmr.msra.gmra.mxu0 %vm697_vm2, %v2258_v28  ;;  %7099 = vmatprep.subr.mxu1 %v7682_v7  ;;  %v2744_v35 = vpop.permute.xlu1 %2743 }
 0x382   : > { %7105 = vmatpush3.xpose.msk.msra.mxu0 %vm697_vm2, %v2416_v50  ;;  %7106 = vmatprep.mubr.msk.f32.mxu0 %vm7683_vm1, %v7682_v7 }
 0x383   : > { %7092 = vmatmul.mubr.msk.f32.vlgmr.msra.gmra.mxu1 %vm697_vm2, %v8080_v27  ;;  %7114 = vmatprep.subr.mxu0 %v7682_v7 }
 0x384   : > { %7100 = vmatpush3.xpose.msk.msra.mxu1 %vm697_vm2, %v2338_v46  ;;  %7101 = vmatprep.mubr.msk.f32.mxu1 %vm7683_vm1, %v7682_v7 }
 0x385   : > { %7107 = vmatmul.mubr.msk.f32.vlgmr.msra.gmra.mxu0 %vm697_vm2, %v2414_v54  ;;  %7109 = vmatprep.subr.mxu1 %v7682_v7 }
 0x386   : > { %7115 = vmatpush3.xpose.msk.msra.mxu0 %vm697_vm2, %v2572_v26  ;;  %7116 = vmatprep.mubr.msk.f32.mxu0 %vm7683_vm1, %v7682_v7 }
 0x387   : > { %7102 = vmatmul.mubr.msk.f32.vlgmr.msra.gmra.mxu1 %vm697_vm2, %v2336_v31  ;;  %7124 = vmatprep.subr.mxu0 %v7682_v7 }
 0x388   : > { %7110 = vmatpush3.xpose.msk.msra.mxu1 %vm697_vm2, %v2494_v23  ;;  %7111 = vmatprep.mubr.msk.f32.mxu1 %vm7683_vm1, %v7682_v7 }
 0x389   : > { %7117 = vmatmul.mubr.msk.f32.vlgmr.msra.gmra.mxu0 %vm697_vm2, %v2570_v33  ;;  %7119 = vmatprep.subr.mxu1 %v7682_v7 }
 0x38a   : > { %7125 = vmatpush3.msra.mxu0 %v2820_v34  ;;  %7126 = vmatprep.mubr.msk.f32.mxu0 %vm7683_vm1, %v7682_v7 }
 0x38b   : > { %7112 = vmatmul.mubr.msk.f32.vlgmr.msra.gmra.mxu1 %vm697_vm2, %v2492_v32  ;;  %7134 = vmatprep.subr.mxu0 %v7682_v7 }
 0x38c   : > { %7120 = vmatpush3.msra.mxu1 %v2744_v35  ;;  %7121 = vmatprep.mubr.msk.f32.mxu1 %vm7683_vm1, %v7682_v7 }
 0x38d   : > { %7129 = vmatprep.subr.mxu1 %v7682_v7 }
 0x428   : > { %v1479_v36 = vpop.f32.mrf.mxu1 }
 0x429   : > { %2015 = vst.msk [vmem:[#allocation2] sm:$0xff] %vm697_vm2, %v1479_v36 }
 0x42a   : > { %v7043_v37 = vpop.f32.mrf.mxu1 }
 0x42c   : > { %v1555_v55 = vpop.f32.mrf.mxu0 }
 0x42d   : > { %2016 = vst.msk [vmem:[#allocation2 + $0x8] sm:$0xff] %vm697_vm2, %v1555_v55  ;;  %v1631_v56 = vpop.f32.mrf.mxu1 }
 0x42e   : > { %2017 = vst.msk [vmem:[#allocation2 + $0x10] sm:$0xff] %vm697_vm2, %v1631_v56  ;;  %v7048_v57 = vpop.f32.mrf.mxu0 }
 0x42f   : > { %v7053_v58 = vpop.f32.mrf.mxu1 }
 0x431   : > { %v1707_v59 = vpop.f32.mrf.mxu0 }
 0x432   : > { %2018 = vst.msk [vmem:[#allocation2 + $0x18] sm:$0xff] %vm697_vm2, %v1707_v59 }
 0x433   : > { %v7058_v61 = vpop.f32.mrf.mxu0 }
 0x434   : > { %v1783_v62 = vpop.f32.mrf.mxu1 }
 0x435   : > { %2019 = vst.msk [vmem:[#allocation2 + $0x20] sm:$0xff] %vm697_vm2, %v1783_v62  ;;  %v1859_v63 = vpop.f32.mrf.mxu0 }
 0x436   : > { %2020 = vst.msk [vmem:[#allocation2 + $0x28] sm:$0xff] %vm697_vm2, %v1859_v63  ;;  %v7063_v0 = vpop.f32.mrf.mxu1  ;;  %v2896_v63 = vpop.permute.xlu1 %2895 }
 0x437   : > { %v7068_v1 = vpop.f32.mrf.mxu0 }
 0x439   : > { %v2011_v2 = vpop.f32.mrf.mxu0 }
 0x43a   : > { %2022 = vst.msk [vmem:[#allocation2 + $0x38] sm:$0xff] %vm697_vm2, %v2011_v2  ;;  %v2972_v0 = vpop.permute.xlu1 %2971  ;;  %v8249_v2 = vpop.permute.xlu0 %3047 }
 0x43b   : > { %v1935_v3 = vpop.f32.mrf.mxu1  ;;  %v7078_v5 = vpop.f32.mrf.mxu0 }
 0x43c   : > { %2021 = vst.msk [vmem:[#allocation2 + $0x30] sm:$0xff] %vm697_vm2, %v1935_v3 }
 0x43d   : > { %v7073_v8 = vpop.f32.mrf.mxu1  ;;  %v2175_v9 = vpop.f32.mrf.mxu0 }
 0x43e   : > { %v2648_v12 = vmul.f32 0.35355338, %v2175_v9  ;;  %v8247_v1 = vpop.permute.xlu1 %3123  ;;  %v8253_v5 = vpop.permute.xlu0 %3199 }
 0x43f   : > { %v2097_v18 = vpop.f32.mrf.mxu1  ;;  %v7088_v21 = vpop.f32.mrf.mxu0 }
 0x440   : > { %v2657_v60 = vmul.f32 1.442695, %v2648_v12  ;;  %v2647_v25 = vmul.f32 0.35355338, %v2097_v18 }
 0x441   : > { %v7083_v27 = vpop.f32.mrf.mxu1  ;;  %v2331_v38 = vpop.f32.mrf.mxu0 }
 0x442   : > { %7442 = vpow2.f32 %v2657_v60  ;;  %v2655_v39 = vmul.f32 1.442695, %v2647_v25  ;;  %v2650_v40 = vmul.f32 0.35355338, %v2331_v38  ;;  %v8251_v3 = vpop.permute.xlu1 %3275  ;;  %v8257_v9 = vpop.permute.xlu0 %3394 }
 0x443   : > { %v2253_v41 = vpop.f32.mrf.mxu1  ;;  %v7098_v28 = vpop.f32.mrf.mxu0 }
 0x444   : > { %7444 = vpow2.f32 %v2655_v39  ;;  %v2649_v4 = vmul.f32 0.35355338, %v2253_v41  ;;  %v2661_v43 = vmul.f32 1.442695, %v2650_v40 }
 0x445   : > { %v7093_v6 = vpop.f32.mrf.mxu1  ;;  %v2487_v42 = vpop.f32.mrf.mxu0 }
 0x446   : > { %v2659_v44 = vmul.f32 1.442695, %v2649_v4  ;;  %v2652_v45 = vmul.f32 0.35355338, %v2487_v42  ;;  %v8255_v8 = vpop.permute.xlu1 %3472  ;;  %v8261_v18 = vpop.permute.xlu0 %3392 }
 0x447   : > { %v2409_v29 = vpop.f32.mrf.mxu1  ;;  %v7108_v46 = vpop.f32.mrf.mxu0 }
 0x448   : > { %7446 = vpow2.f32 %v2659_v44  ;;  %v2651_v30 = vmul.f32 0.35355338, %v2409_v29  ;;  %v2665_v48 = vmul.f32 1.442695, %v2652_v45 }
 0x449   : > { %v7103_v47 = vpop.f32.mrf.mxu1  ;;  %v2643_v10 = vpop.f32.mrf.mxu0  ;;  %7448 = vpow2.f32 %v2661_v43 }
 0x44a   : > { %v2663_v49 = vmul.f32 1.442695, %v2651_v30  ;;  %v2654_v50 = vmul.f32 0.35355338, %v2643_v10  ;;  %v8259_v12 = vpop.permute.xlu1 %3470 }
 0x44b   : > { %v2565_v51 = vpop.f32.mrf.mxu1  ;;  %v7118_v52 = vpop.f32.mrf.mxu0 }
 0x44c   : > { %7450 = vpow2.f32 %v2663_v49  ;;  %v2653_v13 = vmul.f32 0.35355338, %v2565_v51  ;;  %v2669_v31 = vmul.f32 1.442695, %v2654_v50 }
 0x44d   : > { %v7113_v17 = vpop.f32.mrf.mxu1  ;;  %7452 = vpow2.f32 %v2665_v48 }
 0x44e   : > { %v2667_v53 = vmul.f32 1.442695, %v2653_v13 }
 0x44f   : > { %v8175_v54 = vpop.eup %7442 }
 0x450   : > { %7454 = vpow2.f32 %v2667_v53  ;;  %v2674_v23 = vsel %vm697_vm2, %v8175_v54, 0.0 }
 0x451   : > { %v8179_v26 = vpop.eup %7444  ;;  %2675 = vadd.xlane.f32.xlu1 %v2674_v23  ;;  %7456 = vpow2.f32 %v2669_v31 }
 0x452   : > { %v2671_v32 = vsel %vm697_vm2, %v8179_v26, 0.0 }
 0x453   : > { %2672 = vadd.xlane.f32.xlu0 %v2671_v32 }
 0x455   : > { %v8183_v33 = vpop.eup %7446 }
 0x456   : > { %v2677_v34 = vsel %vm697_vm2, %v8183_v33, 0.0  ;;  %v8187_v35 = vpop.eup %7448 }
 0x457   : > { %2678 = vadd.xlane.f32.xlu0 %v2677_v34  ;;  %v2680_v37 = vsel %vm697_vm2, %v8187_v35, 0.0 }
 0x459   : > { %v8189_v36 = vpop.eup %7450 }
 0x45a   : > { %v2683_v55 = vsel %vm697_vm2, %v8189_v36, 0.0  ;;  %v8195_v56 = vpop.eup %7452 }
 0x45b   : > { %2681 = vadd.xlane.f32.xlu0 %v2680_v37  ;;  %2684 = vadd.xlane.f32.xlu1 %v2683_v55  ;;  %v2686_v58 = vsel %vm697_vm2, %v8195_v56, 0.0 }
 0x45d   : > { %v8197_v57 = vpop.eup %7454 }
 0x45e   : > { %v2689_v59 = vsel %vm697_vm2, %v8197_v57, 0.0  ;;  %v8203_v61 = vpop.eup %7456 }
 0x45f   : > { %2687 = vadd.xlane.f32.xlu0 %v2686_v58  ;;  %2690 = vadd.xlane.f32.xlu1 %v2689_v59  ;;  %v2692_v62 = vsel %vm697_vm2, %v8203_v61, 0.0 }
 0x463   : > { %2693 = vadd.xlane.f32.xlu0 %v2692_v62 }
 0x470   : > { %3628 = vrot.lane.b32.xlu1 %v7898_v16, %s7689_s11 }
 0x474   : > { %3626 = vrot.lane.b32.xlu1 %v7898_v16, %s7690_s18 }
 0x478   : > { %3784 = vrot.lane.b32.xlu1 %v7903_v20, %s7689_s11 }
 0x479   : > { %3550 = vrot.lane.b32.xlu0 %v7894_v15, %s7689_s11 }
 0x47c   : > { %3782 = vrot.lane.b32.xlu1 %v7903_v20, %s7690_s18 }
 0x47d   : > { %3548 = vrot.lane.b32.xlu0 %v7894_v15, %s7690_s18 }
 0x480   : > { %3940 = vrot.lane.b32.xlu1 %v7907_v22, %s7689_s11 }
 0x481   : > { %3706 = vrot.lane.b32.xlu0 %v7901_v19, %s7689_s11 }
 0x484   : > { %3938 = vrot.lane.b32.xlu1 %v7907_v22, %s7690_s18 }
 0x485   : > { %3704 = vrot.lane.b32.xlu0 %v7901_v19, %s7690_s18 }
 0x488   : > { %4112 = vrot.lane.b32.xlu1 %v7889_v11, %s7691_s20 }
 0x489   : > { %3862 = vrot.lane.b32.xlu0 %v7909_v24, %s7689_s11  ;;  %s398_s11 = sand.u32 1, %s7668_s15  }
 0x48c   : > { %4264 = vrot.lane.b32.xlu1 %v7894_v15, %s7691_s20 }
 0x48d   : > { %3860 = vrot.lane.b32.xlu0 %v7909_v24, %s7690_s18  ;;  %s6701_s18 = sshll.u32 %s398_s11, 3 }
 0x490   : > { %4340 = vrot.lane.b32.xlu1 %v7898_v16, %s7691_s20 }
 0x491   : > { %4188 = vrot.lane.b32.xlu0 %v7892_v14, %s7691_s20 }
 0x494   : > { %4492 = vrot.lane.b32.xlu1 %v7903_v20, %s7691_s20 }
 0x495   : > { %4416 = vrot.lane.b32.xlu0 %v7901_v19, %s7691_s20 }
 0x498   : > { %4644 = vrot.lane.b32.xlu1 %v7907_v22, %s7691_s20 }
 0x499   : > { %4568 = vrot.lane.b32.xlu0 %v7909_v24, %s7691_s20  ;;  %s6824_s20 = sshll.u32 %s7778_s9, 7  ;;  %s7698_s9 = smov [#allocation7]  }
 0x49a   : > { %s7616_s29 = sshll.u32 %s7698_s9, 4  ;;  %s7617_s29 = int_to_ptr.vmem [resolvable:$false] %s7616_s29 }
 0x49b   : > { %s7618_s2 = scalar_lea.vmem %s7617_s29, 256 }
 0x49c   : > { %4841 = vrot.lane.b32.xlu1 %v7892_v14, %s7692_s25 }
 0x49d   : > { %4763 = vrot.lane.b32.xlu0 %v7889_v11, %s7692_s25 }
 0x4a0   : > { %4839 = vrot.lane.b32.xlu1 %v7892_v14, %s7693_s21 }
 0x4a1   : > { %4761 = vrot.lane.b32.xlu0 %v7889_v11, %s7693_s21 }
 0x4da   : > { %v2676_v21 = vpop.xlane.xlu1 %2675 }
 0x4db   : > { %v2696_v60 = vadd.f32 1e-08, %v2676_v21 }
 0x4dc   : > { %v2673_v25 = vpop.xlane.xlu0 %2672 }
 0x4dd   : > { %7458 = vrcp.f32 %v2696_v60  ;;  %v2695_v27 = vadd.f32 1e-08, %v2673_v25 }
 0x4df   : > { %7460 = vrcp.f32 %v2695_v27 }
 0x4e0   : > { %v2679_v38 = vpop.xlane.xlu0 %2678 }
 0x4e1   : > { %v2697_v39 = vadd.f32 1e-08, %v2679_v38 }
 0x4e3   : > { %7462 = vrcp.f32 %v2697_v39 }
 0x4e4   : > { %v2685_v40 = vpop.xlane.xlu1 %2684  ;;  %v2682_v41 = vpop.xlane.xlu0 %2681 }
 0x4e5   : > { %v2699_v28 = vadd.f32 1e-08, %v2685_v40  ;;  %v2698_v4 = vadd.f32 1e-08, %v2682_v41 }
 0x4e7   : > { %7464 = vrcp.f32 %v2699_v28 }
 0x4e8   : > { %7466 = vrcp.f32 %v2698_v4  ;;  %v2691_v6 = vpop.xlane.xlu1 %2690  ;;  %v2688_v42 = vpop.xlane.xlu0 %2687 }
 0x4e9   : > { %v2701_v43 = vadd.f32 1e-08, %v2691_v6  ;;  %v2700_v44 = vadd.f32 1e-08, %v2688_v42 }
 0x4ea   : > { %v7459_v45 = vpop.eup %7458 }
 0x4eb   : > { %v2712_v29 = vmul.f32 %v7459_v45, %v2696_v60  ;;  %7468 = vrcp.f32 %v2701_v43 }
 0x4ec   : > { %v7461_v46 = vpop.eup %7460  ;;  %7470 = vrcp.f32 %v2700_v44  ;;  %v2694_v30 = vpop.xlane.xlu0 %2693 }
 0x4ed   : > { %v2720_v47 = vsub.f32 2.0, %v2712_v29  ;;  %v2711_v10 = vmul.f32 %v7461_v46, %v2695_v27  ;;  %v8263_v48 = vpop.permute.xlu1 %3628  ;;  %v2702_v49 = vadd.f32 1e-08, %v2694_v30 }
 0x4ef   : > { %v2728_v50 = vmul.f32 %v7459_v45, %v2720_v47  ;;  %v2719_v51 = vsub.f32 2.0, %v2711_v10  ;;  %7472 = vrcp.f32 %v2702_v49 }
 0x4f0   : > { %v7463_v52 = vpop.eup %7462  ;;  %v8266_v53 = vpop.permute.xlu0 %3550 }
 0x4f1   : > { %v2736_v13 = vmul.f32 %v8175_v54, %v2728_v50  ;;  %v2727_v17 = vmul.f32 %v7461_v46, %v2719_v51  ;;  %v2713_v31 = vmul.f32 %v7463_v52, %v2697_v39  ;;  %v8269_v34 = vpop.permute.xlu1 %3626 }
 0x4f3   : > { %v2735_v23 = vmul.f32 %v8179_v26, %v2727_v17  ;;  %v2721_v32 = vsub.f32 2.0, %v2713_v31  ;;  %7127 = vmatmul.mubr.msk.f32.vlgmr.msra.gmra.mxu0 %vm697_vm2, %v2736_v13 }
 0x4f4   : > { %v7465_v37 = vpop.eup %7464  ;;  %7135 = vmatpush3.msra.mxu0 %v2972_v0  ;;  %7136 = vmatprep.mubr.msk.f32.mxu0 %vm7683_vm1, %v7682_v7  ;;  %v3549_v60 = vpop.permute.xlu0 %3548 }
 0x4f5   : > { %v7467_v55 = vpop.eup %7466  ;;  %v2729_v58 = vmul.f32 %v7463_v52, %v2721_v32  ;;  %v2715_v59 = vmul.f32 %v7465_v37, %v2699_v28  ;;  %7122 = vmatmul.mubr.msk.f32.vlgmr.msra.gmra.mxu1 %vm697_vm2, %v2735_v23  ;;  %7144 = vmatprep.subr.mxu0 %v7682_v7  ;;  %v3785_v39 = vpop.permute.xlu1 %3784 }
 0x4f6   : > { %v2714_v54 = vmul.f32 %v7467_v55, %v2698_v4  ;;  %7130 = vmatpush3.msra.mxu1 %v2896_v63  ;;  %7131 = vmatprep.mubr.msk.f32.mxu1 %vm7683_vm1, %v7682_v7 }
 0x4f7   : > { %v2737_v26 = vmul.f32 %v8183_v33, %v2729_v58  ;;  %v2723_v62 = vsub.f32 2.0, %v2715_v59  ;;  %7139 = vmatprep.subr.mxu1 %v7682_v7 }
 0x4f8   : > { %v7469_v0 = vpop.eup %7468  ;;  %v2722_v21 = vsub.f32 2.0, %v2714_v54 }
 0x4f9   : > { %v7471_v25 = vpop.eup %7470  ;;  %v2731_v27 = vmul.f32 %v7465_v37, %v2723_v62  ;;  %v2717_v38 = vmul.f32 %v7469_v0, %v2701_v43  ;;  %7132 = vmatmul.mubr.msk.f32.vlgmr.msra.gmra.mxu1 %vm697_vm2, %v2737_v26  ;;  %v3783_v29 = vpop.permute.xlu1 %3782 }
 0x4fa   : > { %v2730_v40 = vmul.f32 %v7467_v55, %v2722_v21  ;;  %v2716_v41 = vmul.f32 %v7471_v25, %v2700_v44  ;;  %7140 = vmatpush3.msra.mxu1 %v8249_v2  ;;  %7141 = vmatprep.mubr.msk.f32.mxu1 %vm7683_vm1, %v7682_v7  ;;  %v3707_v44 = vpop.permute.xlu0 %3706 }
 0x4fb   : > { %v2739_v33 = vmul.f32 %v8189_v36, %v2731_v27  ;;  %v2725_v63 = vsub.f32 2.0, %v2717_v38  ;;  %7149 = vmatprep.subr.mxu1 %v7682_v7 }
 0x4fc   : > { %v7473_v28 = vpop.eup %7472  ;;  %v2738_v4 = vmul.f32 %v8187_v35, %v2730_v40  ;;  %v2724_v6 = vsub.f32 2.0, %v2716_v41 }
 0x4fd   : > { %v2733_v42 = vmul.f32 %v7469_v0, %v2725_v63  ;;  %v2718_v43 = vmul.f32 %v7473_v28, %v2702_v49  ;;  %7142 = vmatmul.mubr.msk.f32.vlgmr.msra.gmra.mxu1 %vm697_vm2, %v2739_v33 }
 0x4fe   : > { %v2732_v45 = vmul.f32 %v7471_v25, %v2724_v6  ;;  %7137 = vmatmul.mubr.msk.f32.vlgmr.msra.gmra.mxu0 %vm697_vm2, %v2738_v4  ;;  %7150 = vmatpush3.msra.mxu1 %v8253_v5 }
 0x4ff   : > { %v2741_v2 = vmul.f32 %v8197_v57, %v2733_v42  ;;  %v2726_v36 = vsub.f32 2.0, %v2718_v43  ;;  %7145 = vmatpush3.msra.mxu0 %v8247_v1  ;;  %7146 = vmatprep.mubr.msk.f32.mxu0 %vm7683_vm1, %v7682_v7  ;;  %v3941_v1 = vpop.permute.xlu1 %3940 }
 0x500   : > { %v2740_v35 = vmul.f32 %v8195_v56, %v2732_v45  ;;  %7151 = vmatprep.mubr.msk.f32.mxu1 %vm7683_vm1, %v7682_v7  ;;  %7154 = vmatprep.subr.mxu0 %v7682_v7  ;;  %v3705_v56 = vpop.permute.xlu0 %3704 }
 0x501   : > { %v2734_v46 = vmul.f32 %v7473_v28, %v2726_v36  ;;  %7159 = vmatprep.subr.mxu1 %v7682_v7  ;;  %7152 = vmatmul.mubr.msk.f32.vlgmr.msra.gmra.mxu1 %vm697_vm2, %v2741_v2 }
 0x502   : > { %7147 = vmatmul.mubr.msk.f32.vlgmr.msra.gmra.mxu0 %vm697_vm2, %v2740_v35  ;;  %7160 = vmatpush3.xpose.msk.msra.mxu1 %vm697_vm2, %v8257_v9 }
 0x503   : > { %v2742_v57 = vmul.f32 %v8203_v61, %v2734_v46  ;;  %7155 = vmatpush3.msra.mxu0 %v8251_v3  ;;  %7156 = vmatprep.mubr.msk.f32.mxu0 %vm7683_vm1, %v7682_v7  ;;  %v3939_v3 = vpop.permute.xlu1 %3938 }
 0x504   : > { %7161 = vmatprep.mubr.msk.f32.mxu1 %vm7683_vm1, %v7682_v7  ;;  %7164 = vmatprep.subr.mxu0 %v7682_v7  ;;  %v3863_v61 = vpop.permute.xlu0 %3862 }
 0x505   : > { %7169 = vmatprep.subr.mxu1 %v7682_v7  ;;  %7162 = vmatmul.mubr.msk.f32.vlgmr.msra.gmra.mxu1 %vm697_vm2, %v8261_v18 }
 0x506   : > { %7157 = vmatmul.mubr.msk.f32.vlgmr.msra.gmra.mxu0 %vm697_vm2, %v2742_v57  ;;  %7170 = vmatpush3.xpose.msk.msra.mxu1 %vm697_vm2, %v8266_v53 }
 0x507   : > { %7165 = vmatpush3.xpose.msk.msra.mxu0 %vm697_vm2, %v8255_v8  ;;  %7166 = vmatprep.mubr.msk.f32.mxu0 %vm7683_vm1, %v7682_v7  ;;  %v4113_v8 = vpop.permute.xlu1 %4112 }
 0x508   : > { %7171 = vmatprep.mubr.msk.f32.mxu1 %vm7683_vm1, %v7682_v7  ;;  %7174 = vmatprep.subr.mxu0 %v7682_v7  ;;  %v3861_v5 = vpop.permute.xlu0 %3860 }
 0x509   : > { %7179 = vmatprep.subr.mxu1 %v7682_v7  ;;  %7172 = vmatmul.mubr.msk.f32.vlgmr.msra.gmra.mxu1 %vm697_vm2, %v3549_v60 }
 0x50a   : > { %7167 = vmatmul.mubr.msk.f32.vlgmr.msra.gmra.mxu0 %vm697_vm2, %v8259_v12  ;;  %7180 = vmatpush3.xpose.msk.msra.mxu1 %vm697_vm2, %v3707_v44 }
 0x50b   : > { %7175 = vmatpush3.xpose.msk.msra.mxu0 %vm697_vm2, %v8263_v48  ;;  %7176 = vmatprep.mubr.msk.f32.mxu0 %vm7683_vm1, %v7682_v7 }
 0x50c   : > { %7181 = vmatprep.mubr.msk.f32.mxu1 %vm7683_vm1, %v7682_v7  ;;  %7184 = vmatprep.subr.mxu0 %v7682_v7  ;;  %v4189_v9 = vpop.permute.xlu0 %4188 }
 0x50d   : > { %7189 = vmatprep.subr.mxu1 %v7682_v7  ;;  %7182 = vmatmul.mubr.msk.f32.vlgmr.msra.gmra.mxu1 %vm697_vm2, %v3705_v56 }
 0x50e   : > { %7177 = vmatmul.mubr.msk.f32.vlgmr.msra.gmra.mxu0 %vm697_vm2, %v8269_v34  ;;  %7190 = vmatpush3.xpose.msk.msra.mxu1 %vm697_vm2, %v3863_v61 }
 0x50f   : > { %7185 = vmatpush3.xpose.msk.msra.mxu0 %vm697_vm2, %v3785_v39  ;;  %7186 = vmatprep.mubr.msk.f32.mxu0 %vm7683_vm1, %v7682_v7 }
 0x510   : > { %7191 = vmatprep.mubr.msk.f32.mxu1 %vm7683_vm1, %v7682_v7  ;;  %7194 = vmatprep.subr.mxu0 %v7682_v7 }
 0x511   : > { %7199 = vmatprep.subr.mxu1 %v7682_v7  ;;  %7192 = vmatmul.mubr.msk.f32.vlgmr.msra.gmra.mxu1 %vm697_vm2, %v3861_v5 }
 0x512   : > { %7187 = vmatmul.mubr.msk.f32.vlgmr.msra.gmra.mxu0 %vm697_vm2, %v3783_v29  ;;  %7200 = vmatpush3.msra.mxu1 %v4113_v8 }
 0x513   : > { %7195 = vmatpush3.xpose.msk.msra.mxu0 %vm697_vm2, %v3941_v1  ;;  %7196 = vmatprep.mubr.msk.f32.mxu0 %vm7683_vm1, %v7682_v7 }
 0x514   : > { %7204 = vmatprep.subr.mxu0 %v7682_v7  ;;  %7201 = vmatprep.mubr.msk.f32.mxu1 %vm7683_vm1, %v7682_v7 }
 0x515   : > { %7209 = vmatprep.subr.mxu1 %v7682_v7 }
 0x516   : > { %7197 = vmatmul.mubr.msk.f32.vlgmr.msra.gmra.mxu0 %vm697_vm2, %v3939_v3 }
 0x517   : > { %7205 = vmatpush3.msra.mxu0 %v4189_v9  ;;  %7206 = vmatprep.mubr.msk.f32.mxu0 %vm7683_vm1, %v7682_v7 }
 0x518   : > { %7214 = vmatprep.subr.mxu0 %v7682_v7 }
 0x5b3   : > { %v8360_v12 = vpop.f32.mrf.mxu0 }
 0x5b5   : > { %v8362_v18 = vpop.f32.mrf.mxu1  ;;  %v7128_v30 = vpop.f32.mrf.mxu0 }
 0x5b7   : > { %v7123_v47 = vpop.f32.mrf.mxu1 }
 0x5b9   : > { %v8364_v10 = vpop.f32.mrf.mxu1 }
 0x5bb   : > { %v7133_v48 = vpop.f32.mrf.mxu1 }
 0x5bd   : > { %v8366_v49 = vpop.f32.mrf.mxu1 }
 0x5be   : > { %v8368_v50 = vpop.f32.mrf.mxu0 }
 0x5bf   : > { %v7143_v51 = vpop.f32.mrf.mxu1 }
 0x5c0   : > { %v7138_v52 = vpop.f32.mrf.mxu0 }
 0x5c1   : > { %v8370_v13 = vpop.f32.mrf.mxu1 }
 0x5c2   : > { %v8372_v17 = vpop.f32.mrf.mxu0 }
 0x5c3   : > { %v7153_v31 = vpop.f32.mrf.mxu1 }
 0x5c4   : > { %v7148_v53 = vpop.f32.mrf.mxu0 }
 0x5c5   : > { %v3466_v23 = vpop.f32.mrf.mxu1 }
 0x5c6   : > { %v8374_v32 = vpop.f32.mrf.mxu0  ;;  %v4016_v34 = vmul.f32 0.35355338, %v3466_v23 }
 0x5c7   : > { %v7163_v37 = vpop.f32.mrf.mxu1 }
 0x5c8   : > { %v4024_v55 = vmul.f32 1.442695, %v4016_v34  ;;  %v7158_v58 = vpop.f32.mrf.mxu0  ;;  %v4265_v37 = vpop.permute.xlu1 %4264 }
 0x5c9   : > { %v3622_v59 = vpop.f32.mrf.mxu1  ;;  %v8442_v58 = vpop.permute.xlu0 %4416 }
 0x5ca   : > { %7474 = vpow2.f32 %v4024_v55  ;;  %v3544_v54 = vpop.f32.mrf.mxu0  ;;  %v4018_v26 = vmul.f32 0.35355338, %v3622_v59 }
 0x5cb   : > { %v4017_v62 = vmul.f32 0.35355338, %v3544_v54  ;;  %v7173_v0 = vpop.f32.mrf.mxu1 }
 0x5cc   : > { %v4028_v21 = vmul.f32 1.442695, %v4018_v26  ;;  %v7168_v60 = vpop.f32.mrf.mxu0  ;;  %v8440_v55 = vpop.permute.xlu1 %4340 }
 0x5cd   : > { %v4026_v25 = vmul.f32 1.442695, %v4017_v62  ;;  %v3778_v27 = vpop.f32.mrf.mxu1  ;;  %v8446_v59 = vpop.permute.xlu0 %4568 }
 0x5ce   : > { %7476 = vpow2.f32 %v4028_v21  ;;  %v3700_v38 = vpop.f32.mrf.mxu0  ;;  %v4020_v39 = vmul.f32 0.35355338, %v3778_v27 }
 0x5cf   : > { %7478 = vpow2.f32 %v4026_v25  ;;  %v4019_v40 = vmul.f32 0.35355338, %v3700_v38  ;;  %v7183_v41 = vpop.f32.mrf.mxu1 }
 0x5d0   : > { %v4032_v33 = vmul.f32 1.442695, %v4020_v39  ;;  %v7178_v63 = vpop.f32.mrf.mxu0 }
 0x5d1   : > { %v4030_v28 = vmul.f32 1.442695, %v4019_v40  ;;  %v3934_v4 = vpop.f32.mrf.mxu1 }
 0x5d2   : > { %7480 = vpow2.f32 %v4032_v33  ;;  %v3856_v6 = vpop.f32.mrf.mxu0  ;;  %v4022_v42 = vmul.f32 0.35355338, %v3934_v4 }
 0x5d3   : > { %7482 = vpow2.f32 %v4030_v28  ;;  %v4021_v43 = vmul.f32 0.35355338, %v3856_v6  ;;  %v7193_v45 = vpop.f32.mrf.mxu1 }
 0x5d4   : > { %v4036_v44 = vmul.f32 1.442695, %v4022_v42  ;;  %v7188_v2 = vpop.f32.mrf.mxu0 }
 0x5d5   : > { %v4034_v36 = vmul.f32 1.442695, %v4021_v43 }
 0x5d6   : > { %7484 = vpow2.f32 %v4036_v44  ;;  %v4012_v29 = vpop.f32.mrf.mxu0 }
 0x5d7   : > { %v8376_v35 = vpop.eup %7474  ;;  %7486 = vpow2.f32 %v4034_v36  ;;  %v4023_v46 = vmul.f32 0.35355338, %v4012_v29 }
 0x5d8   : > { %v7198_v57 = vpop.f32.mrf.mxu0  ;;  %v4040_v56 = vsel %vm697_vm2, %v8376_v35, 0.0 }
 0x5d9   : > { %v4038_v1 = vmul.f32 1.442695, %v4023_v46  ;;  %4041 = vadd.xlane.f32.xlu0 %v4040_v56 }
 0x5db   : > { %v8380_v61 = vpop.eup %7476  ;;  %7488 = vpow2.f32 %v4038_v1 }
 0x5dc   : > { %v8382_v3 = vpop.eup %7478  ;;  %v4046_v5 = vsel %vm697_vm2, %v8380_v61, 0.0 }
 0x5dd   : > { %v4043_v8 = vsel %vm697_vm2, %v8382_v3, 0.0  ;;  %4047 = vadd.xlane.f32.xlu0 %v4046_v5 }
 0x5de   : > { %4044 = vadd.xlane.f32.xlu1 %v4043_v8 }
 0x5df   : > { %v8388_v9 = vpop.eup %7480 }
 0x5e0   : > { %v8390_v30 = vpop.eup %7482  ;;  %v4052_v47 = vsel %vm697_vm2, %v8388_v9, 0.0 }
 0x5e1   : > { %v4049_v48 = vsel %vm697_vm2, %v8390_v30, 0.0 }
 0x5e2   : > { %4050 = vadd.xlane.f32.xlu0 %v4049_v48  ;;  %4053 = vadd.xlane.f32.xlu1 %v4052_v47 }
 0x5e3   : > { %v8396_v51 = vpop.eup %7484 }
 0x5e4   : > { %v8398_v52 = vpop.eup %7486  ;;  %v4058_v31 = vsel %vm697_vm2, %v8396_v51, 0.0 }
 0x5e5   : > { %v4055_v53 = vsel %vm697_vm2, %v8398_v52, 0.0 }
 0x5e6   : > { %4056 = vadd.xlane.f32.xlu0 %v4055_v53  ;;  %4059 = vadd.xlane.f32.xlu1 %v4058_v31 }
 0x5e8   : > { %v8404_v23 = vpop.eup %7488 }
 0x5e9   : > { %v4061_v34 = vsel %vm697_vm2, %v8404_v23, 0.0 }
 0x5ea   : > { %4062 = vadd.xlane.f32.xlu0 %v4061_v34 }
 0x5f7   : > { %4997 = vrot.lane.b32.xlu1 %v7898_v16, %s7692_s25 }
 0x5fb   : > { %4995 = vrot.lane.b32.xlu1 %v7898_v16, %s7693_s21 }
 0x5ff   : > { %5153 = vrot.lane.b32.xlu1 %v7903_v20, %s7692_s25 }
 0x600   : > { %4919 = vrot.lane.b32.xlu0 %v7894_v15, %s7692_s25 }
 0x603   : > { %5151 = vrot.lane.b32.xlu1 %v7903_v20, %s7693_s21 }
 0x604   : > { %4917 = vrot.lane.b32.xlu0 %v7894_v15, %s7693_s21 }
 0x607   : > { %5309 = vrot.lane.b32.xlu1 %v7907_v22, %s7692_s25 }
 0x608   : > { %5075 = vrot.lane.b32.xlu0 %v7901_v19, %s7692_s25 }
 0x60b   : > { %5307 = vrot.lane.b32.xlu1 %v7907_v22, %s7693_s21 }
 0x60c   : > { %5073 = vrot.lane.b32.xlu0 %v7901_v19, %s7693_s21 }
 0x60f   : > { %5481 = vrot.lane.b32.xlu1 %v7889_v11, %s7694_s26  ;;  %v8444_v11 = vpop.permute.xlu1 %4492 }
 0x610   : > { %5231 = vrot.lane.b32.xlu0 %v7909_v24, %s7692_s25  ;;  %s400_s25 = scalar_lea.vmem [#allocation7], %s6701_s18 }
 0x613   : > { %5633 = vrot.lane.b32.xlu1 %v7894_v15, %s7694_s26  ;;  %v8448_v54 = vpop.permute.xlu1 %4644  ;;  %v8450_v15 = vpop.permute.xlu0 %4763 }
 0x614   : > { %5229 = vrot.lane.b32.xlu0 %v7909_v24, %s7693_s21  ;;  %s6603_s21 = sshll.u32 %s400_s25, 4  ;;  %s6604_s21 = int_to_ptr.vmem [resolvable:$true] %s6603_s21 }
 0x615   : > { %s7612_s28 = scalar_lea.vmem %s6604_s21, 128  ;;  %p7619_p11 = scmp.lt.s32.totalorder %s6604_s21, %s7617_s29 }
 0x616   : > { %p7613_p8 = scmp.ne.s32.totalorder %s6604_s21, %s7612_s28  ;;  %p7620_p12 = scmp.lt.s32.totalorder %s7618_s2, %s7612_s28 }
 0x617   : > { %5709 = vrot.lane.b32.xlu1 %v7898_v16, %s7694_s26  ;;  %v8452_v26 = vpop.permute.xlu1 %4841  ;;  %v8454_v62 = vpop.permute.xlu0 %4761 }
 0x618   : > { %5557 = vrot.lane.b32.xlu0 %v7892_v14, %s7694_s26  ;;  %p7614_p9 = pnand %p7613_p8, %p7795_p5  ;;  %p7621_p13 = por %p7620_p12, %p7619_p11 }
 0x61a   : > { %p7615_p10 = pneg %p7614_p9 }
 0x61b   : > { %v8456_v0 = vpop.permute.xlu1 %4839 }
 0x61c   : > { %p7622_p0 = pnand %p7621_p13, %p7615_p10 }
 0x662   : > { %v4042_v16 = vpop.xlane.xlu0 %4041 }
 0x663   : > { %v4064_v14 = vadd.f32 1e-08, %v4042_v16 }
 0x665   : > { %7490 = vrcp.f32 %v4064_v14 }
 0x666   : > { %v4048_v21 = vpop.xlane.xlu0 %4047 }
 0x667   : > { %v4045_v60 = vpop.xlane.xlu1 %4044  ;;  %v4066_v25 = vadd.f32 1e-08, %v4048_v21 }
 0x668   : > { %v4065_v27 = vadd.f32 1e-08, %v4045_v60 }
 0x669   : > { %7492 = vrcp.f32 %v4066_v25 }
 0x66a   : > { %7494 = vrcp.f32 %v4065_v27 }
 0x66b   : > { %v4054_v38 = vpop.xlane.xlu1 %4053  ;;  %v4051_v39 = vpop.xlane.xlu0 %4050 }
 0x66c   : > { %v4068_v40 = vadd.f32 1e-08, %v4054_v38  ;;  %v4067_v41 = vadd.f32 1e-08, %v4051_v39 }
 0x66e   : > { %7496 = vrcp.f32 %v4068_v40 }
 0x66f   : > { %7498 = vrcp.f32 %v4067_v41  ;;  %v4060_v33 = vpop.xlane.xlu1 %4059  ;;  %v4057_v63 = vpop.xlane.xlu0 %4056 }
 0x670   : > { %v4070_v28 = vadd.f32 1e-08, %v4060_v33  ;;  %v4069_v4 = vadd.f32 1e-08, %v4057_v63 }
 0x672   : > { %v7491_v6 = vpop.eup %7490  ;;  %7500 = vrcp.f32 %v4070_v28 }
 0x673   : > { %v4080_v42 = vmul.f32 %v7491_v6, %v4064_v14  ;;  %7502 = vrcp.f32 %v4069_v4  ;;  %v4063_v43 = vpop.xlane.xlu0 %4062  ;;  %v8458_v45 = vpop.permute.xlu1 %4997 }
 0x674   : > { %v4071_v44 = vadd.f32 1e-08, %v4063_v43 }
 0x675   : > { %v4088_v2 = vsub.f32 2.0, %v4080_v42 }
 0x676   : > { %v7493_v36 = vpop.eup %7492  ;;  %7504 = vrcp.f32 %v4071_v44 }
 0x677   : > { %v7495_v29 = vpop.eup %7494  ;;  %v4096_v46 = vmul.f32 %v7491_v6, %v4088_v2  ;;  %v4082_v57 = vmul.f32 %v7493_v36, %v4066_v25  ;;  %v8461_v8 = vpop.permute.xlu0 %4919 }
 0x678   : > { %v4081_v56 = vmul.f32 %v7495_v29, %v4065_v27  ;;  %v8463_v48 = vpop.permute.xlu1 %4995 }
 0x679   : > { %v4104_v1 = vmul.f32 %v8376_v35, %v4096_v46  ;;  %v4090_v5 = vsub.f32 2.0, %v4082_v57 }
 0x67a   : > { %v4089_v47 = vsub.f32 2.0, %v4081_v56 }
 0x67b   : > { %v7497_v31 = vpop.eup %7496  ;;  %v4098_v53 = vmul.f32 %v7493_v36, %v4090_v5  ;;  %7202 = vmatmul.mubr.msk.f32.vlgmr.msra.gmra.mxu1 %vm697_vm2, %v4104_v1  ;;  %v4918_v39 = vpop.permute.xlu0 %4917 }
 0x67c   : > { %v7499_v34 = vpop.eup %7498  ;;  %v4097_v16 = vmul.f32 %v7495_v29, %v4089_v47  ;;  %v4084_v14 = vmul.f32 %v7497_v31, %v4068_v40  ;;  %7210 = vmatpush3.msra.mxu1 %v4265_v37  ;;  %7211 = vmatprep.mubr.msk.f32.mxu1 %vm7683_vm1, %v7682_v7  ;;  %v8472_v37 = vpop.permute.xlu1 %5153 }
 0x67d   : > { %v4106_v21 = vmul.f32 %v8380_v61, %v4098_v53  ;;  %v4083_v35 = vmul.f32 %v7499_v34, %v4067_v41  ;;  %7219 = vmatprep.subr.mxu1 %v7682_v7 }
 0x67e   : > { %v4105_v60 = vmul.f32 %v8382_v3, %v4097_v16  ;;  %v4092_v25 = vsub.f32 2.0, %v4084_v14 }
 0x67f   : > { %v7501_v27 = vpop.eup %7500  ;;  %v4091_v38 = vsub.f32 2.0, %v4083_v35  ;;  %7212 = vmatmul.mubr.msk.f32.vlgmr.msra.gmra.mxu1 %vm697_vm2, %v4106_v21  ;;  %v5076_v2 = vpop.permute.xlu0 %5075 }
 0x680   : > { %v7503_v33 = vpop.eup %7502  ;;  %v4100_v63 = vmul.f32 %v7497_v31, %v4092_v25  ;;  %v4086_v40 = vmul.f32 %v7501_v27, %v4070_v28  ;;  %7207 = vmatmul.mubr.msk.f32.vlgmr.msra.gmra.mxu0 %vm697_vm2, %v4105_v60  ;;  %7220 = vmatpush3.msra.mxu1 %v8442_v58  ;;  %v5152_v29 = vpop.permute.xlu1 %5151 }
 0x681   : > { %v4099_v61 = vmul.f32 %v7499_v34, %v4091_v38  ;;  %v4085_v41 = vmul.f32 %v7503_v33, %v4069_v4  ;;  %7215 = vmatpush3.msra.mxu0 %v8440_v55  ;;  %7216 = vmatprep.mubr.msk.f32.mxu0 %vm7683_vm1, %v7682_v7 }
 0x682   : > { %v4108_v3 = vmul.f32 %v8388_v9, %v4100_v63  ;;  %v4094_v6 = vsub.f32 2.0, %v4086_v40  ;;  %7221 = vmatprep.mubr.msk.f32.mxu1 %vm7683_vm1, %v7682_v7  ;;  %7224 = vmatprep.subr.mxu0 %v7682_v7 }
 0x683   : > { %v7505_v28 = vpop.eup %7504  ;;  %v4107_v42 = vmul.f32 %v8390_v30, %v4099_v61  ;;  %v4093_v43 = vsub.f32 2.0, %v4085_v41  ;;  %7229 = vmatprep.subr.mxu1 %v7682_v7 }
 0x684   : > { %v4102_v58 = vmul.f32 %v7501_v27, %v4094_v6  ;;  %v4087_v4 = vmul.f32 %v7505_v28, %v4071_v44  ;;  %7222 = vmatmul.mubr.msk.f32.vlgmr.msra.gmra.mxu1 %vm697_vm2, %v4108_v3 }
 0x685   : > { %v4101_v55 = vmul.f32 %v7503_v33, %v4093_v43  ;;  %7217 = vmatmul.mubr.msk.f32.vlgmr.msra.gmra.mxu0 %vm697_vm2, %v4107_v42  ;;  %7230 = vmatpush3.msra.mxu1 %v8446_v59 }
 0x686   : > { %v4110_v9 = vmul.f32 %v8396_v51, %v4102_v58  ;;  %v4095_v36 = vsub.f32 2.0, %v4087_v4  ;;  %7225 = vmatpush3.msra.mxu0 %v8444_v11  ;;  %7226 = vmatprep.mubr.msk.f32.mxu0 %vm7683_vm1, %v7682_v7  ;;  %v5310_v11 = vpop.permute.xlu1 %5309 }
 0x687   : > { %v4109_v30 = vmul.f32 %v8398_v52, %v4101_v55  ;;  %7231 = vmatprep.mubr.msk.f32.mxu1 %vm7683_vm1, %v7682_v7  ;;  %7234 = vmatprep.subr.mxu0 %v7682_v7  ;;  %v5074_v52 = vpop.permute.xlu0 %5073 }
 0x688   : > { %v4103_v44 = vmul.f32 %v7505_v28, %v4095_v36  ;;  %7239 = vmatprep.subr.mxu1 %v7682_v7  ;;  %7232 = vmatmul.mubr.msk.f32.vlgmr.msra.gmra.mxu1 %vm697_vm2, %v4110_v9 }
 0x689   : > { %7227 = vmatmul.mubr.msk.f32.vlgmr.msra.gmra.mxu0 %vm697_vm2, %v4109_v30  ;;  %7240 = vmatpush3.xpose.msk.msra.mxu1 %vm697_vm2, %v8450_v15 }
 0x68a   : > { %v4111_v51 = vmul.f32 %v8404_v23, %v4103_v44  ;;  %7235 = vmatpush3.msra.mxu0 %v8448_v54  ;;  %7236 = vmatprep.mubr.msk.f32.mxu0 %vm7683_vm1, %v7682_v7  ;;  %v5308_v59 = vpop.permute.xlu1 %5307 }
 0x68b   : > { %7241 = vmatprep.mubr.msk.f32.mxu1 %vm7683_vm1, %v7682_v7  ;;  %7244 = vmatprep.subr.mxu0 %v7682_v7  ;;  %v5232_v23 = vpop.permute.xlu0 %5231 }
 0x68c   : > { %7249 = vmatprep.subr.mxu1 %v7682_v7  ;;  %7242 = vmatmul.mubr.msk.f32.vlgmr.msra.gmra.mxu1 %vm697_vm2, %v8454_v62 }
 0x68d   : > { %7237 = vmatmul.mubr.msk.f32.vlgmr.msra.gmra.mxu0 %vm697_vm2, %v4111_v51  ;;  %7250 = vmatpush3.xpose.msk.msra.mxu1 %vm697_vm2, %v8461_v8 }
 0x68e   : > { %7245 = vmatpush3.xpose.msk.msra.mxu0 %vm697_vm2, %v8452_v26  ;;  %7246 = vmatprep.mubr.msk.f32.mxu0 %vm7683_vm1, %v7682_v7  ;;  %v5482_v15 = vpop.permute.xlu1 %5481 }
 0x68f   : > { %7251 = vmatprep.mubr.msk.f32.mxu1 %vm7683_vm1, %v7682_v7  ;;  %7254 = vmatprep.subr.mxu0 %v7682_v7  ;;  %v5230_v54 = vpop.permute.xlu0 %5229 }
 0x690   : > { %7259 = vmatprep.subr.mxu1 %v7682_v7  ;;  %7252 = vmatmul.mubr.msk.f32.vlgmr.msra.gmra.mxu1 %vm697_vm2, %v4918_v39 }
 0x691   : > { %7247 = vmatmul.mubr.msk.f32.vlgmr.msra.gmra.mxu0 %vm697_vm2, %v8456_v0  ;;  %7260 = vmatpush3.xpose.msk.msra.mxu1 %vm697_vm2, %v5076_v2 }
 0x692   : > { %7255 = vmatpush3.xpose.msk.msra.mxu0 %vm697_vm2, %v8458_v45  ;;  %7256 = vmatprep.mubr.msk.f32.mxu0 %vm7683_vm1, %v7682_v7 }
 0x693   : > { %7261 = vmatprep.mubr.msk.f32.mxu1 %vm7683_vm1, %v7682_v7  ;;  %7264 = vmatprep.subr.mxu0 %v7682_v7  ;;  %v5558_v26 = vpop.permute.xlu0 %5557 }
 0x694   : > { %7269 = vmatprep.subr.mxu1 %v7682_v7  ;;  %7262 = vmatmul.mubr.msk.f32.vlgmr.msra.gmra.mxu1 %vm697_vm2, %v5074_v52 }
 0x695   : > { %7257 = vmatmul.mubr.msk.f32.vlgmr.msra.gmra.mxu0 %vm697_vm2, %v8463_v48  ;;  %7270 = vmatpush3.xpose.msk.msra.mxu1 %vm697_vm2, %v5232_v23 }
 0x696   : > { %7265 = vmatpush3.xpose.msk.msra.mxu0 %vm697_vm2, %v8472_v37  ;;  %7266 = vmatprep.mubr.msk.f32.mxu0 %vm7683_vm1, %v7682_v7 }
 0x697   : > { %7271 = vmatprep.mubr.msk.f32.mxu1 %vm7683_vm1, %v7682_v7  ;;  %7274 = vmatprep.subr.mxu0 %v7682_v7 }
 0x698   : > { %7279 = vmatprep.subr.mxu1 %v7682_v7  ;;  %7272 = vmatmul.mubr.msk.f32.vlgmr.msra.gmra.mxu1 %vm697_vm2, %v5230_v54 }
 0x699   : > { %7267 = vmatmul.mubr.msk.f32.vlgmr.msra.gmra.mxu0 %vm697_vm2, %v5152_v29  ;;  %7280 = vmatpush3.msra.mxu1 %v5482_v15 }
 0x69a   : > { %7275 = vmatpush3.xpose.msk.msra.mxu0 %vm697_vm2, %v5310_v11  ;;  %7276 = vmatprep.mubr.msk.f32.mxu0 %vm7683_vm1, %v7682_v7 }
 0x69b   : > { %7284 = vmatprep.subr.mxu0 %v7682_v7  ;;  %7281 = vmatprep.mubr.msk.f32.mxu1 %vm7683_vm1, %v7682_v7 }
 0x69c   : > { %7289 = vmatprep.subr.mxu1 %v7682_v7 }
 0x69d   : > { %7277 = vmatmul.mubr.msk.f32.vlgmr.msra.gmra.mxu0 %vm697_vm2, %v5308_v59 }
 0x69e   : > { %7285 = vmatpush3.msra.mxu0 %v5558_v26  ;;  %7286 = vmatprep.mubr.msk.f32.mxu0 %vm7683_vm1, %v7682_v7 }
 0x69f   : > { %7294 = vmatprep.subr.mxu0 %v7682_v7 }
 0x73b   : > { %v8559_v62 = vpop.f32.mrf.mxu1 }
 0x73d   : > { %v7203_v0 = vpop.f32.mrf.mxu1 }
 0x73f   : > { %v8561_v45 = vpop.f32.mrf.mxu1 }
 0x740   : > { %v8563_v46 = vpop.f32.mrf.mxu0 }
 0x741   : > { %v7213_v57 = vpop.f32.mrf.mxu1 }
 0x742   : > { %v7208_v56 = vpop.f32.mrf.mxu0 }
 0x744   : > { %v8565_v1 = vpop.f32.mrf.mxu1 }
 0x745   : > { %v8567_v5 = vpop.f32.mrf.mxu0 }
 0x746   : > { %v7223_v8 = vpop.f32.mrf.mxu1 }
 0x747   : > { %v7218_v47 = vpop.f32.mrf.mxu0 }
 0x748   : > { %v8569_v48 = vpop.f32.mrf.mxu1 }
 0x749   : > { %v8571_v31 = vpop.f32.mrf.mxu0 }
 0x74a   : > { %v7233_v53 = vpop.f32.mrf.mxu1 }
 0x74b   : > { %v7228_v34 = vpop.f32.mrf.mxu0 }
 0x74c   : > { %v4835_v16 = vpop.f32.mrf.mxu1 }
 0x74d   : > { %v8573_v14 = vpop.f32.mrf.mxu0  ;;  %v5385_v21 = vmul.f32 0.35355338, %v4835_v16 }
 0x74e   : > { %v7243_v35 = vpop.f32.mrf.mxu1 }
 0x74f   : > { %v5393_v60 = vmul.f32 1.442695, %v5385_v21  ;;  %v7238_v25 = vpop.f32.mrf.mxu0 }
 0x750   : > { %v4991_v27 = vpop.f32.mrf.mxu1 }
 0x751   : > { %7506 = vpow2.f32 %v5393_v60  ;;  %v4913_v38 = vpop.f32.mrf.mxu0  ;;  %v5387_v39 = vmul.f32 0.35355338, %v4991_v27 }
 0x752   : > { %v5386_v33 = vmul.f32 0.35355338, %v4913_v38  ;;  %v7253_v63 = vpop.f32.mrf.mxu1 }
 0x753   : > { %v5397_v40 = vmul.f32 1.442695, %v5387_v39  ;;  %v7248_v37 = vpop.f32.mrf.mxu0 }
 0x754   : > { %v5395_v61 = vmul.f32 1.442695, %v5386_v33  ;;  %v5147_v41 = vpop.f32.mrf.mxu1 }
 0x755   : > { %7508 = vpow2.f32 %v5397_v40  ;;  %v5069_v3 = vpop.f32.mrf.mxu0  ;;  %v5389_v6 = vmul.f32 0.35355338, %v5147_v41 }
 0x756   : > { %7510 = vpow2.f32 %v5395_v61  ;;  %v5388_v28 = vmul.f32 0.35355338, %v5069_v3  ;;  %v7263_v42 = vpop.f32.mrf.mxu1 }
 0x757   : > { %v5401_v43 = vmul.f32 1.442695, %v5389_v6  ;;  %v7258_v58 = vpop.f32.mrf.mxu0 }
 0x758   : > { %v5399_v4 = vmul.f32 1.442695, %v5388_v28  ;;  %v5303_v55 = vpop.f32.mrf.mxu1 }
 0x759   : > { %7512 = vpow2.f32 %v5401_v43  ;;  %v5225_v2 = vpop.f32.mrf.mxu0  ;;  %v5391_v9 = vmul.f32 0.35355338, %v5303_v55 }
 0x75a   : > { %7514 = vpow2.f32 %v5399_v4  ;;  %v5390_v36 = vmul.f32 0.35355338, %v5225_v2  ;;  %v7273_v29 = vpop.f32.mrf.mxu1 }
 0x75b   : > { %v5405_v30 = vmul.f32 1.442695, %v5391_v9  ;;  %v7268_v44 = vpop.f32.mrf.mxu0 }
 0x75c   : > { %v5403_v51 = vmul.f32 1.442695, %v5390_v36 }
 0x75d   : > { %7516 = vpow2.f32 %v5405_v30  ;;  %v5381_v52 = vpop.f32.mrf.mxu0 }
 0x75e   : > { %v8575_v11 = vpop.eup %7506  ;;  %7518 = vpow2.f32 %v5403_v51  ;;  %v5392_v23 = vmul.f32 0.35355338, %v5381_v52 }
 0x75f   : > { %v7278_v59 = vpop.f32.mrf.mxu0  ;;  %v5409_v54 = vsel %vm697_vm2, %v8575_v11, 0.0 }
 0x760   : > { %v5407_v15 = vmul.f32 1.442695, %v5392_v23  ;;  %5410 = vadd.xlane.f32.xlu0 %v5409_v54 }
 0x762   : > { %v8579_v26 = vpop.eup %7508  ;;  %7520 = vpow2.f32 %v5407_v15 }
 0x763   : > { %v8581_v0 = vpop.eup %7510  ;;  %v5415_v57 = vsel %vm697_vm2, %v8579_v26, 0.0 }
 0x764   : > { %v5412_v56 = vsel %vm697_vm2, %v8581_v0, 0.0  ;;  %5416 = vadd.xlane.f32.xlu0 %v5415_v57 }
 0x765   : > { %5413 = vadd.xlane.f32.xlu1 %v5412_v56 }
 0x766   : > { %v8587_v8 = vpop.eup %7512 }
 0x767   : > { %v8589_v47 = vpop.eup %7514  ;;  %v5421_v53 = vsel %vm697_vm2, %v8587_v8, 0.0 }
 0x768   : > { %v5418_v34 = vsel %vm697_vm2, %v8589_v47, 0.0 }
 0x769   : > { %5419 = vadd.xlane.f32.xlu0 %v5418_v34  ;;  %5422 = vadd.xlane.f32.xlu1 %v5421_v53 }
 0x76a   : > { %v8595_v16 = vpop.eup %7516 }
 0x76b   : > { %v8597_v21 = vpop.eup %7518  ;;  %v5427_v35 = vsel %vm697_vm2, %v8595_v16, 0.0 }
 0x76c   : > { %v5424_v60 = vsel %vm697_vm2, %v8597_v21, 0.0 }
 0x76d   : > { %5425 = vadd.xlane.f32.xlu0 %v5424_v60  ;;  %5428 = vadd.xlane.f32.xlu1 %v5427_v35 }
 0x76f   : > { %v8603_v25 = vpop.eup %7520 }
 0x770   : > { %v5430_v27 = vsel %vm697_vm2, %v8603_v25, 0.0 }
 0x771   : > { %5431 = vadd.xlane.f32.xlu0 %v5430_v27 }
 0x77e   : > { %5861 = vrot.lane.b32.xlu1 %v7903_v20, %s7694_s26 }
 0x782   : > { %6013 = vrot.lane.b32.xlu1 %v7907_v22, %s7694_s26 }
 0x786   : > { %3361 = vrot.lane.b32.xlu1 %v8360_v12, %s7695_s12 }
 0x787   : > { %5785 = vrot.lane.b32.xlu0 %v7901_v19, %s7694_s26  ;;  %v5634_v19 = vpop.permute.xlu1 %5633 }
 0x78a   : > { %4730 = vrot.lane.b32.xlu1 %v8563_v46, %s7696_s13 }
 0x78b   : > { %5937 = vrot.lane.b32.xlu0 %v7909_v24, %s7694_s26  ;;  %v8631_v22 = vpop.permute.xlu1 %5709 }
 0x78e   : > { %3365 = vrot.lane.b32.xlu1 %v8368_v50, %s7695_s12 }
 0x78f   : > { %3359 = vrot.lane.b32.xlu0 %v8362_v18, %s7695_s12 }
 0x792   : > { %4734 = vrot.lane.b32.xlu1 %v8567_v5, %s7696_s13 }
 0x793   : > { %4728 = vrot.lane.b32.xlu0 %v8559_v62, %s7696_s13 }
 0x796   : > { %3369 = vrot.lane.b32.xlu1 %v8372_v17, %s7695_s12 }
 0x797   : > { %3363 = vrot.lane.b32.xlu0 %v8364_v10, %s7695_s12 }
 0x79a   : > { %4738 = vrot.lane.b32.xlu1 %v8571_v31, %s7696_s13 }
 0x79b   : > { %4732 = vrot.lane.b32.xlu0 %v8561_v45, %s7696_s13 }
 0x79e   : > { %3373 = vrot.lane.b32.xlu1 %v8374_v32, %s7695_s12 }
 0x79f   : > { %3367 = vrot.lane.b32.xlu0 %v8366_v49, %s7695_s12 }
 0x7a2   : > { %4742 = vrot.lane.b32.xlu1 %v8573_v14, %s7696_s13 }
 0x7a3   : > { %4736 = vrot.lane.b32.xlu0 %v8565_v1, %s7696_s13 }
 0x7a7   : > { %3371 = vrot.lane.b32.xlu0 %v8370_v13, %s7695_s12 }
 0x7ab   : > { %4740 = vrot.lane.b32.xlu0 %v8569_v48, %s7696_s13  ;;  %s8806_s13 = scalar_lea.hbm %s8854_s10, %s6824_s20 }
 0x7e9   : > { %v5411_v20 = vpop.xlane.xlu0 %5410 }
 0x7ea   : > { %v5433_v24 = vadd.f32 1e-08, %v5411_v20 }
 0x7ec   : > { %7522 = vrcp.f32 %v5433_v24 }
 0x7ed   : > { %v5417_v12 = vpop.xlane.xlu0 %5416 }
 0x7ee   : > { %v5414_v18 = vpop.xlane.xlu1 %5413  ;;  %v5435_v10 = vadd.f32 1e-08, %v5417_v12 }
 0x7ef   : > { %v5434_v50 = vadd.f32 1e-08, %v5414_v18 }
 0x7f0   : > { %7524 = vrcp.f32 %v5435_v10 }
 0x7f1   : > { %7526 = vrcp.f32 %v5434_v50 }
 0x7f2   : > { %v5423_v49 = vpop.xlane.xlu1 %5422  ;;  %v5420_v17 = vpop.xlane.xlu0 %5419 }
 0x7f3   : > { %v5437_v32 = vadd.f32 1e-08, %v5423_v49  ;;  %v5436_v62 = vadd.f32 1e-08, %v5420_v17 }
 0x7f5   : > { %7528 = vrcp.f32 %v5437_v32 }
 0x7f6   : > { %7530 = vrcp.f32 %v5436_v62  ;;  %v5429_v13 = vpop.xlane.xlu1 %5428  ;;  %v5426_v45 = vpop.xlane.xlu0 %5425 }
 0x7f7   : > { %v5439_v46 = vadd.f32 1e-08, %v5429_v13  ;;  %v5438_v1 = vadd.f32 1e-08, %v5426_v45 }
 0x7f9   : > { %v7523_v5 = vpop.eup %7522  ;;  %7532 = vrcp.f32 %v5439_v46 }
 0x7fa   : > { %v5449_v48 = vmul.f32 %v7523_v5, %v5433_v24  ;;  %7534 = vrcp.f32 %v5438_v1  ;;  %v8633_v31 = vpop.permute.xlu1 %5861  ;;  %v5432_v14 = vpop.xlane.xlu0 %5431 }
 0x7fb   : > { %v5440_v38 = vadd.f32 1e-08, %v5432_v14 }
 0x7fc   : > { %v5457_v39 = vsub.f32 2.0, %v5449_v48  ;;  %v6138_v48 = vld [vmem:[#allocation4] sm:$0xff] }
 0x7fd   : > { %v7525_v33 = vpop.eup %7524  ;;  %7536 = vrcp.f32 %v5440_v38 }
 0x7fe   : > { %v7527_v63 = vpop.eup %7526  ;;  %v5465_v40 = vmul.f32 %v7523_v5, %v5457_v39  ;;  %v5451_v37 = vmul.f32 %v7525_v33, %v5435_v10  ;;  %v8635_v61 = vpop.permute.xlu1 %6013  ;;  %v6139_v5 = vld [vmem:[#allocation4 + $0x8] sm:$0xff] }
 0x7ff   : > { %v5786_v41 = vpop.permute.xlu0 %5785  ;;  %v5450_v3 = vmul.f32 %v7527_v63, %v5434_v50 }
 0x800   : > { %v5473_v6 = vmul.f32 %v8575_v11, %v5465_v40  ;;  %v5459_v28 = vsub.f32 2.0, %v5451_v37 }
 0x801   : > { %v5458_v42 = vsub.f32 2.0, %v5450_v3 }
 0x802   : > { %v7529_v43 = vpop.eup %7528  ;;  %v5467_v58 = vmul.f32 %v7525_v33, %v5459_v28  ;;  %v3362_v4 = vpop.permute.xlu1 %3361  ;;  %7282 = vmatmul.mubr.msk.f32.vlgmr.msra.gmra.mxu1 %vm697_vm2, %v5473_v6 }
 0x803   : > { %v5938_v55 = vpop.permute.xlu0 %5937  ;;  %v7531_v2 = vpop.eup %7530  ;;  %v5466_v9 = vmul.f32 %v7527_v63, %v5458_v42  ;;  %v5453_v36 = vmul.f32 %v7529_v43, %v5437_v32  ;;  %3385 = vst.msk [vmem:[#allocation2 + $0x8] sm:$0xff] %vm3383_vm3, %v3362_v4  ;;  %7290 = vmatpush3.msra.mxu1 %v5634_v19  ;;  %7291 = vmatprep.mubr.msk.f32.mxu1 %vm7683_vm1, %v7682_v7 }
 0x804   : > { %v5475_v29 = vmul.f32 %v8579_v26, %v5467_v58  ;;  %v5452_v30 = vmul.f32 %v7531_v2, %v5436_v62  ;;  %7299 = vmatprep.subr.mxu1 %v7682_v7 }
 0x805   : > { %v5474_v44 = vmul.f32 %v8581_v0, %v5466_v9  ;;  %v5461_v51 = vsub.f32 2.0, %v5453_v36 }
 0x806   : > { %v7533_v52 = vpop.eup %7532  ;;  %v5460_v11 = vsub.f32 2.0, %v5452_v30  ;;  %v4731_v23 = vpop.permute.xlu1 %4730  ;;  %7292 = vmatmul.mubr.msk.f32.vlgmr.msra.gmra.mxu1 %vm697_vm2, %v5475_v29 }
 0x807   : > { %v3360_v59 = vpop.permute.xlu0 %3359  ;;  %v7535_v54 = vpop.eup %7534  ;;  %v5469_v15 = vmul.f32 %v7529_v43, %v5461_v51  ;;  %v5455_v57 = vmul.f32 %v7533_v52, %v5439_v46  ;;  %4754 = vst.msk [vmem:[#allocation2 + $0x8] sm:$0xff] %vm4752_vm4, %v4731_v23  ;;  %7287 = vmatmul.mubr.msk.f32.vlgmr.msra.gmra.mxu0 %vm697_vm2, %v5474_v44  ;;  %7300 = vmatpush3.msra.mxu1 %v5786_v41  ;;  %v6141_v46 = vld [vmem:[#allocation4 + $0x18] sm:$0xff] }
 0x808   : > { %3384 = vst.msk [vmem:[#allocation2] sm:$0xff] %vm3383_vm3, %v3360_v59  ;;  %v5468_v26 = vmul.f32 %v7531_v2, %v5460_v11  ;;  %v5454_v56 = vmul.f32 %v7535_v54, %v5438_v1  ;;  %7295 = vmatpush3.msra.mxu0 %v8631_v22  ;;  %7296 = vmatprep.mubr.msk.f32.mxu0 %vm7683_vm1, %v7682_v7  ;;  %v6140_v1 = vld [vmem:[#allocation4 + $0x10] sm:$0xff] }
 0x809   : > { %v5477_v0 = vmul.f32 %v8587_v8, %v5469_v15  ;;  %v5463_v53 = vsub.f32 2.0, %v5455_v57  ;;  %7301 = vmatprep.mubr.msk.f32.mxu1 %vm7683_vm1, %v7682_v7  ;;  %7304 = vmatprep.subr.mxu0 %v7682_v7 }
 0x80a   : > { %v7537_v34 = vpop.eup %7536  ;;  %v5476_v35 = vmul.f32 %v8589_v47, %v5468_v26  ;;  %v5462_v60 = vsub.f32 2.0, %v5454_v56  ;;  %v3366_v27 = vpop.permute.xlu1 %3365  ;;  %7309 = vmatprep.subr.mxu1 %v7682_v7  ;;  %v6812_v26 = vld [vmem:[%s8851_s7] ss:$0 sm:$0xff] }
 0x80b   : > { %v4729_v19 = vpop.permute.xlu0 %4728  ;;  %v5471_v20 = vmul.f32 %v7533_v52, %v5463_v53  ;;  %v5456_v22 = vmul.f32 %v7537_v34, %v5440_v38  ;;  %3387 = vst.msk [vmem:[#allocation2 + $0x18] sm:$0xff] %vm3383_vm3, %v3366_v27  ;;  %7302 = vmatmul.mubr.msk.f32.vlgmr.msra.gmra.mxu1 %vm697_vm2, %v5477_v0 }
 0x80c   : > { %4753 = vst.msk [vmem:[#allocation2] sm:$0xff] %vm4752_vm4, %v4729_v19  ;;  %v5470_v8 = vmul.f32 %v7535_v54, %v5462_v60  ;;  %7297 = vmatmul.mubr.msk.f32.vlgmr.msra.gmra.mxu0 %vm697_vm2, %v5476_v35  ;;  %7310 = vmatpush3.msra.mxu1 %v5938_v55 }
 0x80d   : > { %v5479_v24 = vmul.f32 %v8595_v16, %v5471_v20  ;;  %v5464_v47 = vsub.f32 2.0, %v5456_v22  ;;  %7305 = vmatpush3.msra.mxu0 %v8633_v31  ;;  %7306 = vmatprep.mubr.msk.f32.mxu0 %vm7683_vm1, %v7682_v7 }
 0x80e   : > { %v5478_v12 = vmul.f32 %v8597_v21, %v5470_v8  ;;  %v4735_v18 = vpop.permute.xlu1 %4734  ;;  %7311 = vmatprep.mubr.msk.f32.mxu1 %vm7683_vm1, %v7682_v7  ;;  %7314 = vmatprep.subr.mxu0 %v7682_v7 }
 0x80f   : > { %v3364_v10 = vpop.permute.xlu0 %3363  ;;  %v5472_v50 = vmul.f32 %v7537_v34, %v5464_v47  ;;  %4756 = vst.msk [vmem:[#allocation2 + $0x18] sm:$0xff] %vm4752_vm4, %v4735_v18  ;;  %7312 = vmatmul.mubr.msk.f32.vlgmr.msra.gmra.mxu1 %vm697_vm2, %v5479_v24  ;;  %7319 = vmatprep.subr.mxu1 %v6141_v46  ;;  %v6821_v18 = vld [vmem:[%s8852_s8] ss:$0 sm:$0xff] }
 0x810   : > { %3386 = vst.msk [vmem:[#allocation2 + $0x10] sm:$0xff] %vm3383_vm3, %v3364_v10  ;;  %7307 = vmatmul.mubr.msk.f32.vlgmr.msra.gmra.mxu0 %vm697_vm2, %v5478_v12  ;;  %7320 = vmatpush3.msra.mxu1 %v6141_v46 }
 0x811   : > { %v5480_v16 = vmul.f32 %v8603_v25, %v5472_v50  ;;  %7315 = vmatpush3.msra.mxu0 %v8635_v61  ;;  %7316 = vmatprep.mubr.msk.f32.mxu0 %vm7683_vm1, %v7682_v7 }
 0x812   : > { %v3370_v21 = vpop.permute.xlu1 %3369  ;;  %7321 = vmatprep.subr.mxu1 %v6140_v1 }
 0x813   : > { %v4733_v49 = vpop.permute.xlu0 %4732  ;;  %3389 = vst.msk [vmem:[#allocation2 + $0x28] sm:$0xff] %vm3383_vm3, %v3370_v21  ;;  %7322 = vmatpush3.msra.mxu1 %v6140_v1 }
 0x814   : > { %4755 = vst.msk [vmem:[#allocation2 + $0x10] sm:$0xff] %vm4752_vm4, %v4733_v49  ;;  %7317 = vmatmul.mubr.msk.f32.vlgmr.msra.gmra.mxu0 %vm697_vm2, %v5480_v16  ;;  %7323 = vmatprep.subr.mxu1 %v6139_v5 }
 0x815   : > { %7324 = vmatpush3.msra.mxu1 %v6139_v5 }
 0x816   : > { %v4739_v17 = vpop.permute.xlu1 %4738  ;;  %7325 = vmatprep.subr.mxu1 %v6138_v48 }
 0x817   : > { %v3368_v32 = vpop.permute.xlu0 %3367  ;;  %4758 = vst.msk [vmem:[#allocation2 + $0x28] sm:$0xff] %vm4752_vm4, %v4739_v17  ;;  %7326 = vmatpush3.msra.mxu1 %v6138_v48 }
 0x818   : > { %3388 = vst.msk [vmem:[#allocation2 + $0x20] sm:$0xff] %vm3383_vm3, %v3368_v32 }
 0x81a   : > { %v3374_v25 = vpop.permute.xlu1 %3373 }
 0x81b   : > { %v4737_v62 = vpop.permute.xlu0 %4736  ;;  %3391 = vst.msk [vmem:[#allocation2 + $0x38] sm:$0xff] %vm3383_vm3, %v3374_v25 }
 0x81c   : > { %4757 = vst.msk [vmem:[#allocation2 + $0x20] sm:$0xff] %vm4752_vm4, %v4737_v62 }
 0x81e   : > { %v4743_v7 = vpop.permute.xlu1 %4742 }
 0x81f   : > { %v3372_v13 = vpop.permute.xlu0 %3371  ;;  %4760 = vst.msk [vmem:[#allocation2 + $0x38] sm:$0xff] %vm4752_vm4, %v4743_v7 }
 0x820   : > { %3390 = vst.msk [vmem:[#allocation2 + $0x30] sm:$0xff] %vm3383_vm3, %v3372_v13 }
 0x823   : > { %v4741_v45 = vpop.permute.xlu0 %4740 }
 0x824   : > { %4759 = vst.msk [vmem:[#allocation2 + $0x30] sm:$0xff] %vm4752_vm4, %v4741_v45 }
 0x8c2   : > { %v5553_v31 = vpop.f32.mrf.mxu1 }
 0x8c3   : > { %6097 = vrot.lane.b32.xlu0 %v5553_v31, %s7697_s27 }
 0x8c4   : > { %v7283_v14 = vpop.f32.mrf.mxu1 }
 0x8c6   : > { %v5705_v38 = vpop.f32.mrf.mxu1 }
 0x8c7   : > { %v5629_v39 = vpop.f32.mrf.mxu0  ;;  %6101 = vrot.lane.b32.xlu0 %v5705_v38, %s7697_s27 }
 0x8c8   : > { %6099 = vrot.lane.b32.xlu1 %v5629_v39, %s7697_s27  ;;  %v7293_v33 = vpop.f32.mrf.mxu1 }
 0x8c9   : > { %v7288_v63 = vpop.f32.mrf.mxu0 }
 0x8cb   : > { %v5857_v40 = vpop.f32.mrf.mxu1 }
 0x8cc   : > { %v5781_v37 = vpop.f32.mrf.mxu0  ;;  %6105 = vrot.lane.b32.xlu0 %v5857_v40, %s7697_s27 }
 0x8cd   : > { %6103 = vrot.lane.b32.xlu1 %v5781_v37, %s7697_s27  ;;  %v7303_v61 = vpop.f32.mrf.mxu1 }
 0x8ce   : > { %v7298_v41 = vpop.f32.mrf.mxu0 }
 0x8cf   : > { %v6009_v3 = vpop.f32.mrf.mxu1 }
 0x8d0   : > { %v5933_v6 = vpop.f32.mrf.mxu0  ;;  %6109 = vrot.lane.b32.xlu0 %v6009_v3, %s7697_s27  ;;  %v6822_v3 = vld [vmem:[#allocation3] ss:$0 sm:$0xff] }
 0x8d1   : > { %6107 = vrot.lane.b32.xlu1 %v5933_v6, %s7697_s27  ;;  %v7313_v28 = vpop.f32.mrf.mxu1 }
 0x8d2   : > { %v7308_v42 = vpop.f32.mrf.mxu0 }
 0x8d4   : > { %v6085_v43 = vpop.f32.mrf.mxu0 }
 0x8d5   : > { %6111 = vrot.lane.b32.xlu1 %v6085_v43, %s7697_s27  ;;  %s6590_s27 = scalar_lea.sflag [#allocation6], %s398_s11 }
 0x8d6   : > { %v7318_v58 = vpop.f32.mrf.mxu0 }
 0x935   : > { %v6098_v4 = vpop.permute.xlu0 %6097 }
 0x936   : > { %6122 = vst.msk [vmem:[#allocation2] sm:$0xff] %vm6121_vm5, %v6098_v4 }
 0x939   : > { %v6102_v55 = vpop.permute.xlu0 %6101 }
 0x93a   : > { %v6100_v2 = vpop.permute.xlu1 %6099  ;;  %6124 = vst.msk [vmem:[#allocation2 + $0x10] sm:$0xff] %vm6121_vm5, %v6102_v55 }
 0x93b   : > { %6123 = vst.msk [vmem:[#allocation2 + $0x8] sm:$0xff] %vm6121_vm5, %v6100_v2 }
 0x93d   : > { %v8691_v9 = vld [vmem:[#allocation2] sm:$0xff] }
 0x93e   : > { %v6106_v36 = vpop.permute.xlu0 %6105  ;;  %7327 = vmatprep.mubr.msk.f32.mxu1 %vm564_vm0, %v8691_v9 }
 0x93f   : > { %v6104_v29 = vpop.permute.xlu1 %6103  ;;  %6126 = vst.msk [vmem:[#allocation2 + $0x20] sm:$0xff] %vm6121_vm5, %v6106_v36 }
 0x940   : > { %6125 = vst.msk [vmem:[#allocation2 + $0x18] sm:$0xff] %vm6121_vm5, %v6104_v29 }
 0x941   : > { %v8697_v30 = vld [vmem:[#allocation2 + $0x10] sm:$0xff] }
 0x942   : > { %v6110_v44 = vpop.permute.xlu0 %6109  ;;  %v8699_v51 = vld [vmem:[#allocation2 + $0x8] sm:$0xff] }
 0x943   : > { %v6108_v52 = vpop.permute.xlu1 %6107  ;;  %6128 = vst.msk [vmem:[#allocation2 + $0x30] sm:$0xff] %vm6121_vm5, %v6110_v44  ;;  %7328 = vmatmul.mubr.msk.f32.vlgmr.msra.gmra.mxu1 %vm564_vm0, %v8699_v51 }
 0x944   : > { %6127 = vst.msk [vmem:[#allocation2 + $0x28] sm:$0xff] %vm6121_vm5, %v6108_v52  ;;  %7330 = vmatprep.mubr.msk.f32.mxu1 %vm564_vm0, %v8697_v30 }
 0x946   : > { %v8707_v11 = vld [vmem:[#allocation2 + $0x20] sm:$0xff] }
 0x947   : > { %v6112_v23 = vpop.permute.xlu1 %6111  ;;  %v8709_v59 = vld [vmem:[#allocation2 + $0x18] sm:$0xff] }
 0x948   : > { %6129 = vst.msk [vmem:[#allocation2 + $0x38] sm:$0xff] %vm6121_vm5, %v6112_v23  ;;  %7331 = vmatmul.mubr.msk.f32.gmra.mxu1 %vm564_vm0, %v8709_v59 }
 0x949   : > { %7333 = vmatprep.mubr.msk.f32.mxu1 %vm564_vm0, %v8707_v11 }
 0x94a   : > { %v8716_v54 = vld [vmem:[#allocation2 + $0x30] sm:$0xff] }
 0x94b   : > { %v8718_v15 = vld [vmem:[#allocation2 + $0x28] sm:$0xff] }
 0x94c   : > { %7334 = vmatmul.mubr.msk.f32.gmra.mxu1 %vm564_vm0, %v8718_v15 }
 0x94d   : > { %7336 = vmatprep.mubr.msk.f32.mxu1 %vm564_vm0, %v8716_v54 }
 0x94f   : > { %v8724_v57 = vld [vmem:[#allocation2 + $0x38] sm:$0xff] }
 0x950   : > { %7337 = vmatmul.mubr.msk.f32.gmra.mxu1 %vm564_vm0, %v8724_v57 }
 0xa03   : > { %v7329_v56 = vpop.f32.mrf.mxu1 }
 0xa04   : > { %v6245_v0 = vadd.f32 %v7329_v56, %v6812_v26 }
 0xa05   : > { %v6239_v53 = vpop.f32.mrf.mxu1 }
 0xa06   : > { %7538 = vtanh.f32 %v6245_v0  ;;  %v6240_v34 = vadd.f32 %v6812_v26, %v6239_v53 }
 0xa08   : > { %7540 = vtanh.f32 %v6240_v34  ;;  %v7332_v35 = vpop.f32.mrf.mxu1 }
 0xa09   : > { %v6255_v60 = vadd.f32 %v7332_v35, %v6812_v26 }
 0xa0a   : > { %v6249_v27 = vpop.f32.mrf.mxu1 }
 0xa0b   : > { %7542 = vtanh.f32 %v6255_v60  ;;  %v6250_v19 = vadd.f32 %v6812_v26, %v6249_v27 }
 0xa0c   : > { %v7335_v20 = vpop.f32.mrf.mxu1 }
 0xa0d   : > { %7544 = vtanh.f32 %v6250_v19  ;;  %v6265_v22 = vadd.f32 %v7335_v20, %v6812_v26 }
 0xa0e   : > { %v6259_v8 = vpop.f32.mrf.mxu1 }
 0xa0f   : > { %v6260_v24 = vadd.f32 %v6812_v26, %v6259_v8  ;;  %7546 = vtanh.f32 %v6265_v22 }
 0xa10   : > { %v7338_v47 = vpop.f32.mrf.mxu1 }
 0xa11   : > { %7548 = vtanh.f32 %v6260_v24  ;;  %v6275_v12 = vadd.f32 %v7338_v47, %v6812_v26 }
 0xa12   : > { %v6269_v10 = vpop.f32.mrf.mxu1 }
 0xa13   : > { %v7539_v50 = vpop.eup %7538  ;;  %v6270_v16 = vadd.f32 %v6812_v26, %v6269_v10  ;;  %7550 = vtanh.f32 %v6275_v12 }
 0xa14   : > { %v6294_v21 = vmul.f32 %v7539_v50, %v6821_v18 }
 0xa15   : > { %v7541_v49 = vpop.eup %7540  ;;  %7552 = vtanh.f32 %v6270_v16 }
 0xa16   : > { %v6304_v17 = vsel %vm564_vm0, %v6294_v21, 0.0  ;;  %v6293_v32 = vmul.f32 %v7541_v49, %v6821_v18 }
 0xa17   : > { %6305 = vadd.xlane.f32.xlu1 %v6304_v17 }
 0xa18   : > { %v7543_v25 = vpop.eup %7542  ;;  %v6301_v62 = vsel %vm564_vm0, %v6293_v32, 0.0 }
 0xa19   : > { %6302 = vadd.xlane.f32.xlu0 %v6301_v62  ;;  %v6296_v7 = vmul.f32 %v7543_v25, %v6821_v18 }
 0xa1a   : > { %v7545_v13 = vpop.eup %7544 }
 0xa1b   : > { %v6310_v45 = vsel %vm564_vm0, %v6296_v7, 0.0  ;;  %v6295_v46 = vmul.f32 %v7545_v13, %v6821_v18 }
 0xa1c   : > { %v7547_v1 = vpop.eup %7546 }
 0xa1d   : > { %6311 = vadd.xlane.f32.xlu0 %v6310_v45  ;;  %v6307_v31 = vsel %vm564_vm0, %v6295_v46, 0.0  ;;  %v6298_v14 = vmul.f32 %v7547_v1, %v6821_v18 }
 0xa1e   : > { %v7549_v5 = vpop.eup %7548 }
 0xa1f   : > { %v6297_v48 = vmul.f32 %v7549_v5, %v6821_v18  ;;  %v6316_v40 = vsel %vm564_vm0, %v6298_v14, 0.0 }
 0xa20   : > { %v7551_v38 = vpop.eup %7550 }
 0xa21   : > { %6308 = vadd.xlane.f32.xlu0 %v6307_v31  ;;  %v6313_v39 = vsel %vm564_vm0, %v6297_v48, 0.0  ;;  %v6300_v37 = vmul.f32 %v7551_v38, %v6821_v18 }
 0xa22   : > { %v7553_v33 = vpop.eup %7552  ;;  %6314 = vadd.xlane.f32.xlu1 %v6313_v39 }
 0xa23   : > { %v6299_v63 = vmul.f32 %v7553_v33, %v6821_v18  ;;  %v6322_v41 = vsel %vm564_vm0, %v6300_v37, 0.0 }
 0xa25   : > { %6317 = vadd.xlane.f32.xlu0 %v6316_v40  ;;  %v6319_v61 = vsel %vm564_vm0, %v6299_v63, 0.0 }
 0xa26   : > { %6320 = vadd.xlane.f32.xlu1 %v6319_v61 }
 0xa29   : > { %6323 = vadd.xlane.f32.xlu0 %v6322_v41 }
 0xaa0   : > { %v6306_v6 = vpop.xlane.xlu1 %6305 }
 0xaa1   : > { %v6333_v28 = vadd.f32 %v6822_v3, %v6306_v6 }
 0xaa2   : > { %v6303_v42 = vpop.xlane.xlu0 %6302 }
 0xaa3   : > { %v6342_v43 = vmul.f32 1.442695, %v6333_v28  ;;  %v6332_v58 = vadd.f32 %v6822_v3, %v6303_v42 }
 0xaa5   : > { %7554 = vpow2.f32 %v6342_v43  ;;  %v6340_v4 = vmul.f32 1.442695, %v6332_v58 }
 0xaa6   : > { %v6312_v55 = vpop.xlane.xlu0 %6311 }
 0xaa7   : > { %7556 = vpow2.f32 %v6340_v4  ;;  %v6335_v2 = vadd.f32 %v6822_v3, %v6312_v55 }
 0xaa9   : > { %v6346_v36 = vmul.f32 1.442695, %v6335_v2 }
 0xaaa   : > { %v6309_v29 = vpop.xlane.xlu0 %6308 }
 0xaab   : > { %7558 = vpow2.f32 %v6346_v36  ;;  %v6315_v44 = vpop.xlane.xlu1 %6314  ;;  %v6334_v52 = vadd.f32 %v6822_v3, %v6309_v29 }
 0xaac   : > { %v6336_v23 = vadd.f32 %v6822_v3, %v6315_v44 }
 0xaad   : > { %v6344_v26 = vmul.f32 1.442695, %v6334_v52 }
 0xaae   : > { %v6348_v56 = vmul.f32 1.442695, %v6336_v23  ;;  %v6318_v0 = vpop.xlane.xlu0 %6317 }
 0xaaf   : > { %7560 = vpow2.f32 %v6344_v26  ;;  %v6321_v53 = vpop.xlane.xlu1 %6320  ;;  %v6337_v34 = vadd.f32 %v6822_v3, %v6318_v0 }
 0xab0   : > { %7562 = vpow2.f32 %v6348_v56  ;;  %v6338_v35 = vadd.f32 %v6822_v3, %v6321_v53 }
 0xab1   : > { %v6350_v60 = vmul.f32 1.442695, %v6337_v34 }
 0xab2   : > { %v8742_v27 = vpop.eup %7554  ;;  %v6352_v19 = vmul.f32 1.442695, %v6338_v35  ;;  %v6324_v20 = vpop.xlane.xlu0 %6323 }
 0xab3   : > { %v6364_v22 = vsel %vm6356_vm6, %v8742_v27, 0.0  ;;  %7564 = vpow2.f32 %v6350_v60  ;;  %v6339_v8 = vadd.f32 %v6822_v3, %v6324_v20 }
 0xab4   : > { %v8746_v24 = vpop.eup %7556  ;;  %v6365_v47 = vrot.slane %v6364_v22, 4  ;;  %7566 = vpow2.f32 %v6352_v19 }
 0xab5   : > { %v6357_v12 = vsel %vm6356_vm6, %v8746_v24, 0.0  ;;  %v6354_v18 = vmul.f32 1.442695, %v6339_v8 }
 0xab6   : > { %v6366_v10 = vadd.f32 %v6365_v47, %v6364_v22  ;;  %v6358_v50 = vrot.slane %v6357_v12, 4 }
 0xab7   : > { %7568 = vpow2.f32 %v6354_v18 }
 0xab8   : > { %v8750_v16 = vpop.eup %7558  ;;  %v6359_v21 = vadd.f32 %v6358_v50, %v6357_v12  ;;  %v6367_v49 = vrot.slane %v6366_v10, 2 }
 0xab9   : > { %v6378_v17 = vsel %vm6356_vm6, %v8750_v16, 0.0 }
 0xaba   : > { %v6379_v32 = vrot.slane %v6378_v17, 4  ;;  %v6368_v25 = vadd.f32 %v6367_v49, %v6366_v10  ;;  %v6360_v62 = vrot.slane %v6359_v21, 2 }
 0xabc   : > { %v8754_v7 = vpop.eup %7560  ;;  %v6380_v13 = vadd.f32 %v6379_v32, %v6378_v17  ;;  %v6369_v45 = vrot.slane %v6368_v25, 1  ;;  %v6361_v46 = vadd.f32 %v6360_v62, %v6359_v21 }
 0xabd   : > { %v8756_v1 = vpop.eup %7562  ;;  %v6371_v5 = vsel %vm6356_vm6, %v8754_v7, 0.0 }
 0xabe   : > { %v6385_v48 = vsel %vm6356_vm6, %v8756_v1, 0.0  ;;  %v6372_v31 = vrot.slane %v6371_v5, 4  ;;  %v6370_v14 = vadd.f32 %v6369_v45, %v6368_v25  ;;  %v6362_v38 = vrot.slane %v6361_v46, 1 }
 0xabf   : > { %v6386_v39 = vrot.slane %v6385_v48, 4  ;;  %v6381_v33 = vrot.slane %v6380_v13, 2 }
 0xac0   : > { %v8762_v63 = vpop.eup %7564  ;;  %v6373_v40 = vadd.f32 %v6372_v31, %v6371_v5  ;;  %v6414_v37 = vadd.f32 1e-08, %v6370_v14  ;;  %v6363_v61 = vadd.f32 %v6362_v38, %v6361_v46 }
 0xac1   : > { %v8764_v41 = vpop.eup %7566  ;;  %v6387_v3 = vadd.f32 %v6386_v39, %v6385_v48  ;;  %v6392_v6 = vsel %vm6356_vm6, %v8762_v63, 0.0  ;;  %v6382_v28 = vadd.f32 %v6381_v33, %v6380_v13 }
 0xac2   : > { %v6399_v42 = vsel %vm6356_vm6, %v8764_v41, 0.0  ;;  %v6393_v43 = vrot.slane %v6392_v6, 4  ;;  %7570 = vrcp.f32 %v6414_v37  ;;  %v6413_v58 = vadd.f32 1e-08, %v6363_v61 }
 0xac3   : > { %v6400_v4 = vrot.slane %v6399_v42, 4  ;;  %v6383_v55 = vrot.slane %v6382_v28, 1  ;;  %v6388_v2 = vrot.slane %v6387_v3, 2  ;;  %v6374_v36 = vrot.slane %v6373_v40, 2 }
 0xac4   : > { %v8770_v29 = vpop.eup %7568  ;;  %v6394_v44 = vadd.f32 %v6393_v43, %v6392_v6  ;;  %7572 = vrcp.f32 %v6413_v58 }
 0xac5   : > { %v6401_v52 = vadd.f32 %v6400_v4, %v6399_v42  ;;  %v6406_v23 = vsel %vm6356_vm6, %v8770_v29, 0.0  ;;  %v6384_v26 = vadd.f32 %v6383_v55, %v6382_v28  ;;  %v6389_v56 = vadd.f32 %v6388_v2, %v6387_v3 }
 0xac6   : > { %v6407_v0 = vrot.slane %v6406_v23, 4  ;;  %v6375_v53 = vadd.f32 %v6374_v36, %v6373_v40  ;;  %v6395_v34 = vrot.slane %v6394_v44, 2 }
 0xac7   : > { %v6416_v35 = vadd.f32 1e-08, %v6384_v26  ;;  %v6390_v60 = vrot.slane %v6389_v56, 1  ;;  %v6402_v19 = vrot.slane %v6401_v52, 2 }
 0xac8   : > { %v6408_v20 = vadd.f32 %v6407_v0, %v6406_v23  ;;  %v6376_v22 = vrot.slane %v6375_v53, 1  ;;  %v6396_v8 = vadd.f32 %v6395_v34, %v6394_v44 }
 0xac9   : > { %7574 = vrcp.f32 %v6416_v35  ;;  %v6391_v47 = vadd.f32 %v6390_v60, %v6389_v56  ;;  %v6403_v12 = vadd.f32 %v6402_v19, %v6401_v52 }
 0xaca   : > { %v6377_v18 = vadd.f32 %v6376_v22, %v6375_v53  ;;  %v6397_v10 = vrot.slane %v6396_v8, 1  ;;  %v6409_v50 = vrot.slane %v6408_v20, 2 }
 0xacb   : > { %v6417_v21 = vadd.f32 1e-08, %v6391_v47  ;;  %v6404_v49 = vrot.slane %v6403_v12, 1 }
 0xacc   : > { %v6415_v17 = vadd.f32 1e-08, %v6377_v18  ;;  %v6398_v32 = vadd.f32 %v6397_v10, %v6396_v8  ;;  %v6410_v25 = vadd.f32 %v6409_v50, %v6408_v20 }
 0xacd   : > { %7576 = vrcp.f32 %v6417_v21  ;;  %v6405_v62 = vadd.f32 %v6404_v49, %v6403_v12 }
 0xace   : > { %7578 = vrcp.f32 %v6415_v17  ;;  %v6418_v13 = vadd.f32 1e-08, %v6398_v32  ;;  %v6411_v45 = vrot.slane %v6410_v25, 1 }
 0xacf   : > { %v7571_v46 = vpop.eup %7570  ;;  %v6419_v5 = vadd.f32 1e-08, %v6405_v62 }
 0xad0   : > { %v6430_v48 = vmul.f32 %v7571_v46, %v6414_v37  ;;  %7580 = vrcp.f32 %v6418_v13  ;;  %v6412_v31 = vadd.f32 %v6411_v45, %v6410_v25 }
 0xad1   : > { %v7573_v14 = vpop.eup %7572  ;;  %7582 = vrcp.f32 %v6419_v5 }
 0xad2   : > { %v6438_v38 = vsub.f32 2.0, %v6430_v48  ;;  %v6429_v39 = vmul.f32 %v7573_v14, %v6413_v58  ;;  %v6420_v33 = vadd.f32 1e-08, %v6412_v31 }
 0xad4   : > { %v6446_v40 = vmul.f32 %v7571_v46, %v6438_v38  ;;  %v6437_v61 = vsub.f32 2.0, %v6429_v39  ;;  %7584 = vrcp.f32 %v6420_v33 }
 0xad6   : > { %v7575_v3 = vpop.eup %7574  ;;  %v6454_v6 = vmul.f32 %v8742_v27, %v6446_v40  ;;  %v6445_v28 = vmul.f32 %v7573_v14, %v6437_v61 }
 0xad7   : > { %v6432_v42 = vmul.f32 %v7575_v3, %v6416_v35 }
 0xad8   : > { %6468 = vperm.xlu0 %7408, %v6454_v6   ;;  %v6453_v43 = vmul.f32 %v8746_v24, %v6445_v28 }
 0xad9   : > { %v6440_v4 = vsub.f32 2.0, %v6432_v42 }
 0xada   : > { %v7577_v37 = vpop.eup %7576  ;;  %6463 = vperm.xlu1 %7409, %v6453_v43  }
 0xadb   : > { %v7579_v55 = vpop.eup %7578  ;;  %v6448_v2 = vmul.f32 %v7575_v3, %v6440_v4  ;;  %v6433_v36 = vmul.f32 %v7577_v37, %v6417_v21 }
 0xadc   : > { %v6431_v44 = vmul.f32 %v7579_v55, %v6415_v17 }
 0xadd   : > { %v7581_v58 = vpop.eup %7580  ;;  %v6456_v52 = vmul.f32 %v8750_v16, %v6448_v2  ;;  %v6441_v23 = vsub.f32 2.0, %v6433_v36 }
 0xade   : > { %v7583_v26 = vpop.eup %7582  ;;  %v6439_v56 = vsub.f32 2.0, %v6431_v44  ;;  %v6434_v0 = vmul.f32 %v7581_v58, %v6418_v13 }
 0xadf   : > { %6478 = vperm.xlu1 %7409, %v6456_v52   ;;  %v6449_v27 = vmul.f32 %v7577_v37, %v6441_v23  ;;  %v6435_v53 = vmul.f32 %v7583_v26, %v6419_v5 }
 0xae0   : > { %v6447_v34 = vmul.f32 %v7579_v55, %v6439_v56  ;;  %v6442_v35 = vsub.f32 2.0, %v6434_v0 }
 0xae1   : > { %v7585_v24 = vpop.eup %7584  ;;  %v6457_v60 = vmul.f32 %v8756_v1, %v6449_v27  ;;  %v6443_v19 = vsub.f32 2.0, %v6435_v53 }
 0xae2   : > { %v6455_v20 = vmul.f32 %v8754_v7, %v6447_v34  ;;  %v6450_v22 = vmul.f32 %v7581_v58, %v6442_v35  ;;  %v6436_v8 = vmul.f32 %v7585_v24, %v6420_v33 }
 0xae3   : > { %6483 = vperm.xlu0 %7408, %v6457_v60   ;;  %v6451_v47 = vmul.f32 %v7583_v26, %v6443_v19 }
 0xae4   : > { %6473 = vperm.xlu1 %7409, %v6455_v20   ;;  %v6458_v16 = vmul.f32 %v8762_v63, %v6450_v22  ;;  %v6444_v12 = vsub.f32 2.0, %v6436_v8 }
 0xae5   : > { %v6459_v18 = vmul.f32 %v8764_v41, %v6451_v47 }
 0xae6   : > { %v6452_v10 = vmul.f32 %v7585_v24, %v6444_v12 }
 0xae7   : > { %6493 = vperm.xlu0 %7408, %v6459_v18  }
 0xae8   : > { %6488 = vperm.xlu1 %7409, %v6458_v16   ;;  %v6460_v50 = vmul.f32 %v8770_v29, %v6452_v10 }
 0xaec   : > { %6498 = vperm.xlu1 %7409, %v6460_v50  }
 0xb53   : > { %v6469_v1 = vpop.permute.xlu0 %6468 }
 0xb54   : > { %v6502_v21 = vmul.f32 %v6469_v1, %v8699_v51 }
 0xb55   : > { %v6464_v7 = vpop.permute.xlu1 %6463 }
 0xb56   : > { %v6516_v49 = vsel %vm564_vm0, %v6502_v21, 0.0  ;;  %v6501_v17 = vmul.f32 %v6464_v7, %v8691_v9 }
 0xb57   : > { %v6517_v32 = vrot.slane %v6516_v49, 4 }
 0xb58   : > { %v6509_v63 = vsel %vm564_vm0, %v6501_v17, 0.0 }
 0xb59   : > { %v6510_v25 = vrot.slane %v6509_v63, 4  ;;  %v6518_v45 = vadd.f32 %v6517_v32, %v6516_v49 }
 0xb5a   : > { %v6479_v62 = vpop.permute.xlu1 %6478 }
 0xb5b   : > { %v6511_v41 = vadd.f32 %v6510_v25, %v6509_v63  ;;  %v6504_v13 = vmul.f32 %v6479_v62, %v8709_v59  ;;  %v6519_v14 = vrot.slane %v6518_v45, 2 }
 0xb5d   : > { %v6512_v46 = vrot.slane %v6511_v41, 2  ;;  %v6530_v29 = vsel %vm564_vm0, %v6504_v13, 0.0  ;;  %v6520_v43 = vadd.f32 %v6519_v14, %v6518_v45 }
 0xb5e   : > { %v6531_v5 = vrot.slane %v6530_v29, 4  ;;  %v6484_v48 = vpop.permute.xlu0 %6483 }
 0xb5f   : > { %v6474_v51 = vpop.permute.xlu1 %6473  ;;  %v6505_v31 = vmul.f32 %v6484_v48, %v8707_v11  ;;  %v6513_v39 = vadd.f32 %v6512_v46, %v6511_v41  ;;  %v6521_v56 = vrot.slane %v6520_v43, 1 }
 0xb60   : > { %v6532_v38 = vadd.f32 %v6531_v5, %v6530_v29  ;;  %v6503_v9 = vmul.f32 %v6474_v51, %v8697_v30 }
 0xb61   : > { %v6537_v33 = vsel %vm564_vm0, %v6505_v31, 0.0  ;;  %v6514_v37 = vrot.slane %v6513_v39, 1  ;;  %v6522_v47 = vadd.f32 %v6521_v56, %v6520_v43 }
 0xb62   : > { %v6533_v40 = vrot.slane %v6532_v38, 2  ;;  %v6523_v61 = vsel %vm564_vm0, %v6503_v9, 0.0  ;;  %v6538_v59 = vrot.slane %v6537_v33, 4  ;;  %v6494_v3 = vpop.permute.xlu0 %6493 }
 0xb63   : > { %v6524_v6 = vrot.slane %v6523_v61, 4  ;;  %v6489_v28 = vpop.permute.xlu1 %6488  ;;  %v6507_v42 = vmul.f32 %v6494_v3, %v8716_v54  ;;  %v6515_v34 = vadd.f32 %v6514_v37, %v6513_v39 }
 0xb64   : > { %v6539_v4 = vadd.f32 %v6538_v59, %v6537_v33  ;;  %v6506_v11 = vmul.f32 %v6489_v28, %v8718_v15  ;;  %v6534_v2 = vadd.f32 %v6533_v40, %v6532_v38 }
 0xb65   : > { %v6525_v55 = vadd.f32 %v6524_v6, %v6523_v61  ;;  %v6551_v30 = vsel %vm564_vm0, %v6507_v42, 0.0  ;;  %v6574_v10 = vsel %vm6573_vm7, %v6522_v47, %v6515_v34 }
 0xb66   : > { %v6540_v36 = vrot.slane %v6539_v4, 2  ;;  %v6544_v44 = vsel %vm564_vm0, %v6506_v11, 0.0  ;;  %v6552_v58 = vrot.slane %v6551_v30, 4  ;;  %v6535_v35 = vrot.slane %v6534_v2, 1 }
 0xb67   : > { %v6526_v52 = vrot.slane %v6525_v55, 2  ;;  %v6545_v23 = vrot.slane %v6544_v44, 4  ;;  %v6499_v26 = vpop.permute.xlu1 %6498 }
 0xb68   : > { %v6541_v0 = vadd.f32 %v6540_v36, %v6539_v4  ;;  %v6553_v54 = vadd.f32 %v6552_v58, %v6551_v30  ;;  %v6508_v27 = vmul.f32 %v6499_v26, %v8724_v57  ;;  %v6536_v50 = vadd.f32 %v6535_v35, %v6534_v2 }
 0xb69   : > { %v6527_v15 = vadd.f32 %v6526_v52, %v6525_v55  ;;  %v6546_v53 = vadd.f32 %v6545_v23, %v6544_v44 }
 0xb6a   : > { %v6554_v24 = vrot.slane %v6553_v54, 2  ;;  %v6558_v60 = vsel %vm564_vm0, %v6508_v27, 0.0  ;;  %v6542_v20 = vrot.slane %v6541_v0, 1 }
 0xb6b   : > { %v6528_v19 = vrot.slane %v6527_v15, 1  ;;  %v6547_v22 = vrot.slane %v6546_v53, 2  ;;  %v6559_v8 = vrot.slane %v6558_v60, 4 }
 0xb6c   : > { %v6555_v16 = vadd.f32 %v6554_v24, %v6553_v54  ;;  %v6543_v7 = vadd.f32 %v6542_v20, %v6541_v0 }
 0xb6d   : > { %v6529_v12 = vadd.f32 %v6528_v19, %v6527_v15  ;;  %v6548_v57 = vadd.f32 %v6547_v22, %v6546_v53  ;;  %v6560_v18 = vadd.f32 %v6559_v8, %v6558_v60 }
 0xb6e   : > { %v6556_v1 = vrot.slane %v6555_v16, 1 }
 0xb6f   : > { %v6576_v21 = vsel %vm6575_vm8, %v6529_v12, %v6574_v10  ;;  %v6549_v49 = vrot.slane %v6548_v57, 1  ;;  %v6561_v17 = vrot.slane %v6560_v18, 2 }
 0xb70   : > { %v6578_v32 = vsel %vm6577_vm9, %v6536_v50, %v6576_v21  ;;  %v6557_v41 = vadd.f32 %v6556_v1, %v6555_v16 }
 0xb71   : > { %v6580_v63 = vsel %vm6579_vm10, %v6543_v7, %v6578_v32  ;;  %v6550_v25 = vadd.f32 %v6549_v49, %v6548_v57  ;;  %v6562_v62 = vadd.f32 %v6561_v17, %v6560_v18 }
 0xb73   : > { %v6582_v13 = vsel %vm6581_vm11, %v6550_v25, %v6580_v63  ;;  %v6563_v45 = vrot.slane %v6562_v62, 1 }
 0xb74   : > { %v6584_v29 = vsel %vm6583_vm12, %v6557_v41, %v6582_v13 }
 0xb75   : > { %v6564_v46 = vadd.f32 %v6563_v45, %v6562_v62 }
 0xb77   : > { %v6586_v5 = vsel %vm6585_vm13, %v6564_v46, %v6584_v29 }
 0xb78   : > { %6588 = vst.msk [vmem:[%s400_s25] sm:$0xff] %vm564_vm0, %v6586_v5 }
 0xb79   : > { %7625 = shalt.err (!%p7622_p0)
}
 0xb7a   : > { %s7626_s30 = scalar_lea.hbm %s8806_s13, 128  ;;  %s7630_s20 = scalar_lea.hbm %s8854_s10, 256 }
 0xb7b   : > { %p7627_p1 = scmp.ne.s32.totalorder %s8806_s13, %s7626_s30  ;;  %p7631_p4 = scmp.lt.s32.totalorder %s8806_s13, %s8854_s10 }
 0xb7c   : > { %p7632_p7 = scmp.lt.s32.totalorder %s7630_s20, %s7626_s30 }
 0xb7d   : > { %p7628_p2 = pnand %p7627_p1, %p7795_p5 }
 0xb7e   : > { %p7633_p6 = por %p7632_p7, %p7631_p4 }
 0xb7f   : > { %p7629_p3 = pneg %p7628_p2 }
 0xb81   : > { %p7634_p8 = pnand %p7633_p6, %p7629_p3 }
 0xb83   : > { %7637 = shalt.err (!%p7634_p8)
}
 0xb84   : > { %7343 = dma.vmem_to_hbm [thread:$0]  (%p7795_p5), %s6604_s21, 128, %s8806_s13, %s6590_s27  }
 0xb85 PF: > { %p7355_p9 = scmp.ge.s32.totalorder %s7676_s17, 2  ;;  %s6615_s12 = sand.u32 1, %s7664_s14  }
 0xb86   : > { %p8858_p10 = scmp.ne.s32.totalorder %s8856_s24, 0  ;;  %s6616_s28 = scalar_lea.sflag [#allocation6], %s6615_s12 }
 0xb88   : > { %p7350_p11 = pnand %p7355_p9, %p8858_p10 }
 0xb8a   : > { %p7351_p12 = pneg %p7350_p11 }
 0xb8c   : > { %7659 = dma.done.wait (%p7351_p12), %s6616_s28, 128  }
 0xb8d   : > { %7661 = vsyncadd (%p7351_p12), %s6616_s28, 4294967168  ;;  %p23_p13 = scmp.ge.s32.totalorder %s7782_s19, 4   ;;  %s8859_s14 = smov %s7668_s15 }
 0xb8e   : > { %s8860_s15 = smov %s7672_s16  ;;  %s8861_s16 = smov %s7793_s22 }
 0xb8f   : > { %s8862_s17 = smov %s7782_s19  ;;  %25 = sbr.rel (!%p23_p13) target bundleno = 7 (0x7), region = 106 }
 0xb94   :  { %6621 = vsyncpa [#allocation5], 1 }
 0xb95   :  { %6623 = vsyncpa [#allocation5 + $0x1], 1 }
 0xb96   :  { %6624 = vsyncpa [#allocation6], 1 }
 0xb97   :  { %6626 = vsyncpa [#allocation6 + $0x1], 1 }

</bundles_post_ra>
